<compile_context>
chip_gen: v5e
topology: v5e:2x2
jax: 0.10.0
libtpu: 0.0.40
codegen_flags: <defaults>
</compile_context>

<pallas_src>
import functools

import jax
import jax.numpy as jnp
from jax.experimental import pallas as pl
from jax.experimental.pallas import tpu as pltpu


def _round_up(x, m):
    return (x + m - 1) // m * m


# ------------------------------------------------------------------
# One-time weight layout (wrapper side): transpose, zero-pad, gate-major align.
# PyTorch GRU gate order is (r, z, n) stacked along dim 0 of w_ih / w_hh.
# ------------------------------------------------------------------
def _prep_rnn_weight(w, h, hp, dtype):
    # (3h, h) -> (hp, 3hp): input-major (kernel does h @ W with no transpose),
    # zero-padded, each gate in its own 128-lane-aligned column band.
    out = jnp.zeros((hp, 3 * hp), dtype)
    for g in range(3):
        blk = w[g * h:(g + 1) * h, :].astype(jnp.float32).T.astype(dtype)
        out = out.at[:h, g * hp:g * hp + h].set(blk)
    return out


def _prep_rnn_bias(b, h, hp):
    out = jnp.zeros((1, 3 * hp), jnp.float32)
    for g in range(3):
        out = out.at[0, g * hp:g * hp + h].set(b[g * h:(g + 1) * h].astype(jnp.float32))
    return out


# ------------------------------------------------------------------
# Tile selection: batch tile (parallel axis), time chunk, VMEM-aware shrink.
# ------------------------------------------------------------------
def _choose_tiles(B, T, Dvp, Hp, time_chunk, budget_bytes=28 << 20):
    # Give the "parallel" batch axis >= 2 programs when the batch is big enough so
    # v7x's second TensorCore gets work (v5e/v6e have 1 TC; neutral there).
    if B > 8:
        Bp = _round_up(B, 16)
        tb = Bp // 2
    else:
        Bp = _round_up(max(B, 1), 8)
        tb = Bp

    tc = _round_up(min(time_chunk, _round_up(T, 8)), 8)

    def est(tc_, tb_):
        x_blk = 2 * tc_ * tb_ * Dvp * 2              # bf16 input chunk, double-buffered
        out_blk = 2 * tc_ * tb_ * Hp * 4             # f32 output chunk, double-buffered
        gi_scr = tc_ * tb_ * 3 * Hp * 4              # f32 input-gate scratch
        h_scr = tb_ * Hp * 4                         # f32 hidden carry
        wts = 2 * (Dvp * Hp + 2 * Hp * 3 * Hp) * 2   # bf16 weights, double-buffered
        biases = 2 * (Hp + 2 * 3 * Hp) * 4
        return x_blk + out_blk + gi_scr + h_scr + wts + biases

    # Shrink the time chunk first, then the batch tile, to fit the VMEM budget.
    while tc > 8 and est(tc, tb) > budget_bytes:
        tc = max(8, _round_up(tc // 2, 8))
    while tb > 8 and est(tc, tb) > budget_bytes:
        half = tb // 2
        tb = half if (half % 8 == 0 and Bp % half == 0) else 8

    return Bp, tb, tc, est(tc, tb)


# ------------------------------------------------------------------
# Fused kernel: per (batch-tile, time-chunk) grid step
#   1) gi = (x_chunk @ Wv + bv) @ Wih + bih   -- two big bf16 MXU matmuls -> VMEM scratch
#   2) unrolled GRU recurrence over the chunk; only h @ Whh is serial
# ------------------------------------------------------------------
def _make_fused_gru_kernel(tc, tb, dvp, hp):
    def kernel(x_ref, wv_ref, bv_ref, wih_ref, bih_ref, whh_ref, bhh_ref,
               out_ref, h_ref, gi_ref):
        # Reset the carried hidden state at the start of each batch tile's time sweep.
        @pl.when(pl.program_id(1) == 0)
        def _():
            h_ref[...] = jnp.zeros_like(h_ref)

        # ---- hoisted non-recurrent projection for the whole chunk (bf16 MXU, f32 acc) ----
        x2d = x_ref[...].reshape(tc * tb, dvp)                       # time-major rows, bf16
        y = jnp.dot(x2d, wv_ref[...], preferred_element_type=jnp.float32) + bv_ref[...]
        # TODO(synk): training-mode input_dropout (p=0.2) not implemented; eval-mode identity.
        gi = jnp.dot(y.astype(jnp.bfloat16), wih_ref[...],
                     preferred_element_type=jnp.float32) + bih_ref[...]
        gi_ref[...] = gi.reshape(tc, tb, 3 * hp)

        whh = whh_ref[...]                                           # (hp, 3hp) bf16
        bhh = bhh_ref[...]                                           # (1, 3hp)  f32

        # ---- serial recurrence: only h @ Whh + gate math per step ----
        def step(tt, h):
            gi_t = gi_ref[tt]                                        # (tb, 3hp) f32, full tile
            gh = jnp.dot(h.astype(jnp.bfloat16), whh,
                         preferred_element_type=jnp.float32) + bhh
            r = jax.nn.sigmoid(gi_t[:, 0:hp] + gh[:, 0:hp])
            z = jax.nn.sigmoid(gi_t[:, hp:2 * hp] + gh[:, hp:2 * hp])
            n = jnp.tanh(gi_t[:, 2 * hp:] + r * gh[:, 2 * hp:])
            h_new = (1.0 - z) * n + z * h
            out_ref[tt] = h_new                                      # unmasked aligned store
            return h_new

        h_ref[...] = jax.lax.fori_loop(0, tc, step, h_ref[...], unroll=True)

    return kernel


# ------------------------------------------------------------------
# Full EncoderRNN forward (eval mode)
# ------------------------------------------------------------------
@functools.partial(jax.jit, static_argnames=("time_chunk",))
def encoder_rnn_forward(vid_feats, params, *, time_chunk=32):
    assert time_chunk >= 8 and time_chunk % 8 == 0
    B, T, Dv = vid_feats.shape
    H = params["w_v2h"].shape[0]
    f32, bf16 = jnp.float32, jnp.bfloat16

    # --- hardware-friendly padded sizes (sublane=8 / lane=128) + tile choice ---
    Hp = _round_up(H, 128)
    Dvp = _round_up(Dv, 128)
    Bp, tb, tc, vmem_est = _choose_tiles(B, T, Dvp, Hp, time_chunk)
    Tpad = _round_up(T, tc)

    # --- one-time weight layout: transpose + zero-pad + gate-major alignment (bf16) ---
    wv_t = jnp.zeros((Dvp, Hp), bf16).at[:Dv, :H].set(
        params["w_v2h"].astype(f32).T.astype(bf16))
    bv = jnp.zeros((1, Hp), f32).at[0, :H].set(params["b_v2h"].astype(f32))
    wih_t = _prep_rnn_weight(params["w_ih"], H, Hp, bf16)   # (Hp, 3Hp)
    bih = _prep_rnn_bias(params["b_ih"], H, Hp)             # (1, 3Hp)
    whh_t = _prep_rnn_weight(params["w_hh"], H, Hp, bf16)   # (Hp, 3Hp)
    bhh = _prep_rnn_bias(params["b_hh"], H, Hp)             # (1, 3Hp)

    # --- time-major, zero-padded bf16 input (padded rows / steps discarded later) ---
    x_tm = jnp.zeros((Tpad, Bp, Dvp), bf16).at[:T, :B, :Dv].set(
        jnp.transpose(vid_feats, (1, 0, 2)).astype(bf16))

    grid = (Bp // tb, Tpad // tc)
    vmem_limit = int(min(max(2 * vmem_est + (4 << 20), 32 << 20), 48 << 20))

    out_tm = pl.pallas_call(
        _make_fused_gru_kernel(tc, tb, Dvp, Hp),
        out_shape=jax.ShapeDtypeStruct((Tpad, Bp, Hp), f32),
        grid_spec=pltpu.PrefetchScalarGridSpec(
            num_scalar_prefetch=0,
            grid=grid,
            in_specs=[
                pl.BlockSpec((tc, tb, Dvp), lambda b, c: (c, b, 0)),   # x (time-major)
                pl.BlockSpec((Dvp, Hp), lambda b, c: (0, 0)),          # W_v2h^T (bf16)
                pl.BlockSpec((1, Hp), lambda b, c: (0, 0)),            # b_v2h   (f32)
                pl.BlockSpec((Hp, 3 * Hp), lambda b, c: (0, 0)),       # W_ih^T  (bf16)
                pl.BlockSpec((1, 3 * Hp), lambda b, c: (0, 0)),        # b_ih    (f32)
                pl.BlockSpec((Hp, 3 * Hp), lambda b, c: (0, 0)),       # W_hh^T  (bf16)
                pl.BlockSpec((1, 3 * Hp), lambda b, c: (0, 0)),        # b_hh    (f32)
            ],
            out_specs=pl.BlockSpec((tc, tb, Hp), lambda b, c: (c, b, 0)),
            scratch_shapes=[
                pltpu.VMEM((tb, Hp), f32),               # carried hidden state
                pltpu.VMEM((tc, tb, 3 * Hp), f32),       # per-chunk input gates
            ],
        ),
        compiler_params=pltpu.CompilerParams(
            dimension_semantics=("parallel", "arbitrary"),
            vmem_limit_bytes=vmem_limit,
        ),
    )(x_tm, wv_t, bv, wih_t, bih, whh_t, bhh)

    output = jnp.transpose(out_tm[:T, :B, :H], (1, 0, 2))   # (B, T, H) batch-first
    hidden = out_tm[T - 1, :B, :H][None]                    # (1, B, H) final hidden state
    return output, hidden


# ------------------------------------------------------------------
# Pure-JAX f32 reference (for correctness check)
# ------------------------------------------------------------------
def reference_forward(vid_feats, params):
    B, T, Dv = vid_feats.shape
    H = params["w_v2h"].shape[0]
    x = vid_feats.reshape(B * T, Dv) @ params["w_v2h"].T + params["b_v2h"]
    x = x.reshape(B, T, H)

    def step(h, x_t):
        gi = x_t @ params["w_ih"].T + params["b_ih"]
        gh = h @ params["w_hh"].T + params["b_hh"]
        r = jax.nn.sigmoid(gi[:, 0:H] + gh[:, 0:H])
        z = jax.nn.sigmoid(gi[:, H:2 * H] + gh[:, H:2 * H])
        n = jnp.tanh(gi[:, 2 * H:] + r * gh[:, 2 * H:])
        h_new = (1.0 - z) * n + z * h
        return h_new, h_new

    h0 = jnp.zeros((B, H), jnp.float32)
    h_last, outs = jax.lax.scan(step, h0, jnp.transpose(x, (1, 0, 2)))
    return jnp.transpose(outs, (1, 0, 2)), h_last[None]


if __name__ == "__main__":
    # Small shapes implied by the module: batch=2, seq=8, dim_vid=16, dim_hidden=32.
    B, T, Dv, H = 2, 8, 16, 32

    key = jax.random.PRNGKey(0)
    ks = jax.random.split(key, 7)

    # vid2hid: xavier_normal_ weight, default uniform bias
    std = (2.0 / (Dv + H)) ** 0.5
    w_v2h = std * jax.random.normal(ks[0], (H, Dv), jnp.float32)
    bb = 1.0 / (Dv ** 0.5)
    b_v2h = jax.random.uniform(ks[1], (H,), jnp.float32, -bb, bb)

    # GRU weights: PyTorch default uniform(-1/sqrt(H), 1/sqrt(H)), gate order (r, z, n)
    s = 1.0 / (H ** 0.5)
    w_ih = jax.random.uniform(ks[2], (3 * H, H), jnp.float32, -s, s)
    w_hh = jax.random.uniform(ks[3], (3 * H, H), jnp.float32, -s, s)
    b_ih = jax.random.uniform(ks[4], (3 * H,), jnp.float32, -s, s)
    b_hh = jax.random.uniform(ks[5], (3 * H,), jnp.float32, -s, s)

    params = dict(w_v2h=w_v2h, b_v2h=b_v2h, w_ih=w_ih, w_hh=w_hh,
                  b_ih=b_ih, b_hh=b_hh)

    vid_feats = jax.random.normal(ks[6], (B, T, Dv), jnp.float32)

    output, hidden = encoder_rnn_forward(vid_feats, params)
    jax.block_until_ready((output, hidden))

    ref_out, ref_hidden = reference_forward(vid_feats, params)
    assert output.shape == (B, T, H) and hidden.shape == (1, B, H)
    # bf16 MXU operands (f32 accumulate) -> compare against the f32 reference at ~1e-2.
    assert jnp.allclose(output, ref_out, atol=2e-2, rtol=2e-2)
    assert jnp.allclose(hidden, ref_hidden, atol=2e-2, rtol=2e-2)

    print("KERNEL_OK")
</pallas_src>

<mosaic_0001>
module attributes {stable_mosaic.version = 11 : i64} {
  func.func @kernel(%arg0: i32, %arg1: i32, %arg2: memref<8x8x128xbf16, #tpu.memory_space<vmem>>, %arg3: memref<128x128xbf16, #tpu.memory_space<vmem>>, %arg4: memref<1x128xf32, #tpu.memory_space<vmem>>, %arg5: memref<128x384xbf16, #tpu.memory_space<vmem>>, %arg6: memref<1x384xf32, #tpu.memory_space<vmem>>, %arg7: memref<128x384xbf16, #tpu.memory_space<vmem>>, %arg8: memref<1x384xf32, #tpu.memory_space<vmem>>, %arg9: memref<8x8x128xf32, #tpu.memory_space<vmem>>, %arg10: memref<8x128xf32, #tpu.memory_space<vmem>>, %arg11: memref<8x8x384xf32, #tpu.memory_space<vmem>>) attributes {dimension_semantics = [#tpu.dimension_semantics<parallel>, #tpu.dimension_semantics<arbitrary>], iteration_bounds = array<i64: 1, 1>, scalar_prefetch = 0 : i64, scratch_operands = 2 : i64, tpu.core_type = #tpu.core_type<tc>, window_params = [{transform_indices = @transform_0, window_bounds = array<i64: 8, 8, 128>}, {pipeline_mode = #tpu.pipeline_mode<synchronous>, transform_indices = @transform_1, window_bounds = array<i64: 128, 128>}, {pipeline_mode = #tpu.pipeline_mode<synchronous>, transform_indices = @transform_2, window_bounds = array<i64: 1, 128>}, {pipeline_mode = #tpu.pipeline_mode<synchronous>, transform_indices = @transform_3, window_bounds = array<i64: 128, 384>}, {pipeline_mode = #tpu.pipeline_mode<synchronous>, transform_indices = @transform_4, window_bounds = array<i64: 1, 384>}, {pipeline_mode = #tpu.pipeline_mode<synchronous>, transform_indices = @transform_5, window_bounds = array<i64: 128, 384>}, {pipeline_mode = #tpu.pipeline_mode<synchronous>, transform_indices = @transform_6, window_bounds = array<i64: 1, 384>}, {transform_indices = @transform_7, window_bounds = array<i64: 8, 8, 128>}]} {
    %c0_i32 = arith.constant 0 : i32
    %0 = arith.cmpi eq, %arg1, %c0_i32 : i32
    %1 = arith.extui %0 : i1 to i32
    %c0_i32_0 = arith.constant 0 : i32
    %2 = arith.cmpi ne, %1, %c0_i32_0 : i32
    scf.if %2 {
      %cst_88 = arith.constant 0.000000e+00 : f32
      %318 = vector.broadcast %cst_88 : f32 to vector<8x128xf32>
      %c0_89 = arith.constant 0 : index
      %c0_90 = arith.constant 0 : index
      %319 = vector.load %arg10[%c0_89, %c0_90] : memref<8x128xf32, #tpu.memory_space<vmem>>, vector<8x128xf32>
      tpu.vector_store %arg10[%c0_89, %c0_90], %318 {strides = array<i32>} : memref<8x128xf32, #tpu.memory_space<vmem>>, vector<8x128xf32>,
    } else {
    }
    %c0 = arith.constant 0 : index
    %c0_1 = arith.constant 0 : index
    %c0_2 = arith.constant 0 : index
    %3 = vector.load %arg2[%c0, %c0_1, %c0_2] : memref<8x8x128xbf16, #tpu.memory_space<vmem>>, vector<8x8x128xbf16>
    %4 = vector.shape_cast %3 : vector<8x8x128xbf16> to vector<64x128xbf16>
    %c0_3 = arith.constant 0 : index
    %c0_4 = arith.constant 0 : index
    %5 = vector.load %arg3[%c0_3, %c0_4] : memref<128x128xbf16, #tpu.memory_space<vmem>>, vector<128x128xbf16>
    %cst = arith.constant dense<0.000000e+00> : vector<64x128xf32>
    %6 = tpu.matmul %4, %5, %cst {dimension_numbers = #tpu.dot_dimension_numbers<[1], [0], [0], [1], [0, 0, 1, 1], [], []>} : vector<64x128xbf16>, vector<128x128xbf16>, vector<64x128xf32> -> vector<64x128xf32>
    %c0_5 = arith.constant 0 : index
    %c0_6 = arith.constant 0 : index
    %7 = vector.load %arg4[%c0_5, %c0_6] : memref<1x128xf32, #tpu.memory_space<vmem>>, vector<1x128xf32>
    %8 = vector.broadcast %7 : vector<1x128xf32> to vector<64x128xf32>
    %9 = arith.addf %6, %8 : vector<64x128xf32>
    %10 = arith.truncf %9 : vector<64x128xf32> to vector<64x128xbf16>
    %c0_7 = arith.constant 0 : index
    %c0_8 = arith.constant 0 : index
    %11 = vector.load %arg5[%c0_7, %c0_8] : memref<128x384xbf16, #tpu.memory_space<vmem>>, vector<128x384xbf16>
    %cst_9 = arith.constant dense<0.000000e+00> : vector<64x384xf32>
    %12 = tpu.matmul %10, %11, %cst_9 {dimension_numbers = #tpu.dot_dimension_numbers<[1], [0], [0], [1], [0, 0, 1, 1], [], []>} : vector<64x128xbf16>, vector<128x384xbf16>, vector<64x384xf32> -> vector<64x384xf32>
    %c0_10 = arith.constant 0 : index
    %c0_11 = arith.constant 0 : index
    %13 = vector.load %arg6[%c0_10, %c0_11] : memref<1x384xf32, #tpu.memory_space<vmem>>, vector<1x384xf32>
    %14 = vector.broadcast %13 : vector<1x384xf32> to vector<64x384xf32>
    %15 = arith.addf %12, %14 : vector<64x384xf32>
    %16 = vector.shape_cast %15 : vector<64x384xf32> to vector<8x8x384xf32>
    %c0_12 = arith.constant 0 : index
    %c0_13 = arith.constant 0 : index
    %c0_14 = arith.constant 0 : index
    %17 = vector.load %arg11[%c0_12, %c0_13, %c0_14] : memref<8x8x384xf32, #tpu.memory_space<vmem>>, vector<8x8x384xf32>
    tpu.vector_store %arg11[%c0_12, %c0_13, %c0_14], %16 {strides = array<i32>} : memref<8x8x384xf32, #tpu.memory_space<vmem>>, vector<8x8x384xf32>,
    %c0_15 = arith.constant 0 : index
    %c0_16 = arith.constant 0 : index
    %18 = vector.load %arg7[%c0_15, %c0_16] : memref<128x384xbf16, #tpu.memory_space<vmem>>, vector<128x384xbf16>
    %c0_17 = arith.constant 0 : index
    %c0_18 = arith.constant 0 : index
    %19 = vector.load %arg8[%c0_17, %c0_18] : memref<1x384xf32, #tpu.memory_space<vmem>>, vector<1x384xf32>
    %c0_19 = arith.constant 0 : index
    %c0_20 = arith.constant 0 : index
    %20 = vector.load %arg10[%c0_19, %c0_20] : memref<8x128xf32, #tpu.memory_space<vmem>>, vector<8x128xf32>
    %c0_i32_21 = arith.constant 0 : i32
    %21 = arith.index_cast %c0_i32_21 : i32 to index
    %c0_22 = arith.constant 0 : index
    %c0_23 = arith.constant 0 : index
    %22 = vector.load %arg11[%21, %c0_22, %c0_23] : memref<8x8x384xf32, #tpu.memory_space<vmem>>, vector<1x8x384xf32>
    %23 = vector.shape_cast %22 : vector<1x8x384xf32> to vector<8x384xf32>
    %24 = arith.truncf %20 : vector<8x128xf32> to vector<8x128xbf16>
    %cst_24 = arith.constant dense<0.000000e+00> : vector<8x384xf32>
    %25 = tpu.matmul %24, %18, %cst_24 {dimension_numbers = #tpu.dot_dimension_numbers<[1], [0], [0], [1], [0, 0, 1, 1], [], []>} : vector<8x128xbf16>, vector<128x384xbf16>, vector<8x384xf32> -> vector<8x384xf32>
    %26 = vector.broadcast %19 : vector<1x384xf32> to vector<8x384xf32>
    %27 = arith.addf %25, %26 : vector<8x384xf32>
    %28 = vector.extract_strided_slice %23 {offsets = [0, 0], sizes = [8, 128], strides = [1, 1]} : vector<8x384xf32> to vector<8x128xf32>
    %29 = vector.extract_strided_slice %27 {offsets = [0, 0], sizes = [8, 128], strides = [1, 1]} : vector<8x384xf32> to vector<8x128xf32>
    %30 = arith.addf %28, %29 : vector<8x128xf32>
    %31 = arith.negf %30 : vector<8x128xf32>
    %32 = math.exp %31 : vector<8x128xf32>
    %cst_25 = arith.constant 1.000000e+00 : f32
    %33 = vector.broadcast %cst_25 : f32 to vector<8x128xf32>
    %34 = arith.addf %33, %32 : vector<8x128xf32>
    %35 = arith.divf %33, %34 : vector<8x128xf32>
    %36 = vector.extract_strided_slice %23 {offsets = [0, 128], sizes = [8, 128], strides = [1, 1]} : vector<8x384xf32> to vector<8x128xf32>
    %37 = vector.extract_strided_slice %27 {offsets = [0, 128], sizes = [8, 128], strides = [1, 1]} : vector<8x384xf32> to vector<8x128xf32>
    %38 = arith.addf %36, %37 : vector<8x128xf32>
    %39 = arith.negf %38 : vector<8x128xf32>
    %40 = math.exp %39 : vector<8x128xf32>
    %cst_26 = arith.constant 1.000000e+00 : f32
    %41 = vector.broadcast %cst_26 : f32 to vector<8x128xf32>
    %42 = arith.addf %41, %40 : vector<8x128xf32>
    %43 = arith.divf %41, %42 : vector<8x128xf32>
    %44 = vector.extract_strided_slice %23 {offsets = [0, 256], sizes = [8, 128], strides = [1, 1]} : vector<8x384xf32> to vector<8x128xf32>
    %45 = vector.extract_strided_slice %27 {offsets = [0, 256], sizes = [8, 128], strides = [1, 1]} : vector<8x384xf32> to vector<8x128xf32>
    %46 = arith.mulf %35, %45 : vector<8x128xf32>
    %47 = arith.addf %44, %46 : vector<8x128xf32>
    %48 = math.tanh %47 : vector<8x128xf32>
    %cst_27 = arith.constant 1.000000e+00 : f32
    %49 = vector.broadcast %cst_27 : f32 to vector<8x128xf32>
    %50 = arith.subf %49, %43 : vector<8x128xf32>
    %51 = arith.mulf %50, %48 : vector<8x128xf32>
    %52 = arith.mulf %43, %20 : vector<8x128xf32>
    %53 = arith.addf %51, %52 : vector<8x128xf32>
    %54 = arith.index_cast %c0_i32_21 : i32 to index
    %c0_28 = arith.constant 0 : index
    %c0_29 = arith.constant 0 : index
    %55 = vector.load %arg9[%54, %c0_28, %c0_29] : memref<8x8x128xf32, #tpu.memory_space<vmem>>, vector<1x8x128xf32>
    %56 = vector.shape_cast %55 : vector<1x8x128xf32> to vector<8x128xf32>
    %57 = vector.shape_cast %53 : vector<8x128xf32> to vector<1x8x128xf32>
    tpu.vector_store %arg9[%54, %c0_28, %c0_29], %57 {strides = array<i32>} : memref<8x8x128xf32, #tpu.memory_space<vmem>>, vector<1x8x128xf32>,
    %c1_i32 = arith.constant 1 : i32
    %58 = arith.index_cast %c1_i32 : i32 to index
    %c0_30 = arith.constant 0 : index
    %c0_31 = arith.constant 0 : index
    %59 = vector.load %arg11[%58, %c0_30, %c0_31] : memref<8x8x384xf32, #tpu.memory_space<vmem>>, vector<1x8x384xf32>
    %60 = vector.shape_cast %59 : vector<1x8x384xf32> to vector<8x384xf32>
    %61 = arith.truncf %53 : vector<8x128xf32> to vector<8x128xbf16>
    %cst_32 = arith.constant dense<0.000000e+00> : vector<8x384xf32>
    %62 = tpu.matmul %61, %18, %cst_32 {dimension_numbers = #tpu.dot_dimension_numbers<[1], [0], [0], [1], [0, 0, 1, 1], [], []>} : vector<8x128xbf16>, vector<128x384xbf16>, vector<8x384xf32> -> vector<8x384xf32>
    %63 = vector.broadcast %19 : vector<1x384xf32> to vector<8x384xf32>
    %64 = arith.addf %62, %63 : vector<8x384xf32>
    %65 = vector.extract_strided_slice %60 {offsets = [0, 0], sizes = [8, 128], strides = [1, 1]} : vector<8x384xf32> to vector<8x128xf32>
    %66 = vector.extract_strided_slice %64 {offsets = [0, 0], sizes = [8, 128], strides = [1, 1]} : vector<8x384xf32> to vector<8x128xf32>
    %67 = arith.addf %65, %66 : vector<8x128xf32>
    %68 = arith.negf %67 : vector<8x128xf32>
    %69 = math.exp %68 : vector<8x128xf32>
    %cst_33 = arith.constant 1.000000e+00 : f32
    %70 = vector.broadcast %cst_33 : f32 to vector<8x128xf32>
    %71 = arith.addf %70, %69 : vector<8x128xf32>
    %72 = arith.divf %70, %71 : vector<8x128xf32>
    %73 = vector.extract_strided_slice %60 {offsets = [0, 128], sizes = [8, 128], strides = [1, 1]} : vector<8x384xf32> to vector<8x128xf32>
    %74 = vector.extract_strided_slice %64 {offsets = [0, 128], sizes = [8, 128], strides = [1, 1]} : vector<8x384xf32> to vector<8x128xf32>
    %75 = arith.addf %73, %74 : vector<8x128xf32>
    %76 = arith.negf %75 : vector<8x128xf32>
    %77 = math.exp %76 : vector<8x128xf32>
    %cst_34 = arith.constant 1.000000e+00 : f32
    %78 = vector.broadcast %cst_34 : f32 to vector<8x128xf32>
    %79 = arith.addf %78, %77 : vector<8x128xf32>
    %80 = arith.divf %78, %79 : vector<8x128xf32>
    %81 = vector.extract_strided_slice %60 {offsets = [0, 256], sizes = [8, 128], strides = [1, 1]} : vector<8x384xf32> to vector<8x128xf32>
    %82 = vector.extract_strided_slice %64 {offsets = [0, 256], sizes = [8, 128], strides = [1, 1]} : vector<8x384xf32> to vector<8x128xf32>
    %83 = arith.mulf %72, %82 : vector<8x128xf32>
    %84 = arith.addf %81, %83 : vector<8x128xf32>
    %85 = math.tanh %84 : vector<8x128xf32>
    %cst_35 = arith.constant 1.000000e+00 : f32
    %86 = vector.broadcast %cst_35 : f32 to vector<8x128xf32>
    %87 = arith.subf %86, %80 : vector<8x128xf32>
    %88 = arith.mulf %87, %85 : vector<8x128xf32>
    %89 = arith.mulf %80, %53 : vector<8x128xf32>
    %90 = arith.addf %88, %89 : vector<8x128xf32>
    %91 = arith.index_cast %c1_i32 : i32 to index
    %c0_36 = arith.constant 0 : index
    %c0_37 = arith.constant 0 : index
    %92 = vector.load %arg9[%91, %c0_36, %c0_37] : memref<8x8x128xf32, #tpu.memory_space<vmem>>, vector<1x8x128xf32>
    %93 = vector.shape_cast %92 : vector<1x8x128xf32> to vector<8x128xf32>
    %94 = vector.shape_cast %90 : vector<8x128xf32> to vector<1x8x128xf32>
    tpu.vector_store %arg9[%91, %c0_36, %c0_37], %94 {strides = array<i32>} : memref<8x8x128xf32, #tpu.memory_space<vmem>>, vector<1x8x128xf32>,
    %c2_i32 = arith.constant 2 : i32
    %95 = arith.index_cast %c2_i32 : i32 to index
    %c0_38 = arith.constant 0 : index
    %c0_39 = arith.constant 0 : index
    %96 = vector.load %arg11[%95, %c0_38, %c0_39] : memref<8x8x384xf32, #tpu.memory_space<vmem>>, vector<1x8x384xf32>
    %97 = vector.shape_cast %96 : vector<1x8x384xf32> to vector<8x384xf32>
    %98 = arith.truncf %90 : vector<8x128xf32> to vector<8x128xbf16>
    %cst_40 = arith.constant dense<0.000000e+00> : vector<8x384xf32>
    %99 = tpu.matmul %98, %18, %cst_40 {dimension_numbers = #tpu.dot_dimension_numbers<[1], [0], [0], [1], [0, 0, 1, 1], [], []>} : vector<8x128xbf16>, vector<128x384xbf16>, vector<8x384xf32> -> vector<8x384xf32>
    %100 = vector.broadcast %19 : vector<1x384xf32> to vector<8x384xf32>
    %101 = arith.addf %99, %100 : vector<8x384xf32>
    %102 = vector.extract_strided_slice %97 {offsets = [0, 0], sizes = [8, 128], strides = [1, 1]} : vector<8x384xf32> to vector<8x128xf32>
    %103 = vector.extract_strided_slice %101 {offsets = [0, 0], sizes = [8, 128], strides = [1, 1]} : vector<8x384xf32> to vector<8x128xf32>
    %104 = arith.addf %102, %103 : vector<8x128xf32>
    %105 = arith.negf %104 : vector<8x128xf32>
    %106 = math.exp %105 : vector<8x128xf32>
    %cst_41 = arith.constant 1.000000e+00 : f32
    %107 = vector.broadcast %cst_41 : f32 to vector<8x128xf32>
    %108 = arith.addf %107, %106 : vector<8x128xf32>
    %109 = arith.divf %107, %108 : vector<8x128xf32>
    %110 = vector.extract_strided_slice %97 {offsets = [0, 128], sizes = [8, 128], strides = [1, 1]} : vector<8x384xf32> to vector<8x128xf32>
    %111 = vector.extract_strided_slice %101 {offsets = [0, 128], sizes = [8, 128], strides = [1, 1]} : vector<8x384xf32> to vector<8x128xf32>
    %112 = arith.addf %110, %111 : vector<8x128xf32>
    %113 = arith.negf %112 : vector<8x128xf32>
    %114 = math.exp %113 : vector<8x128xf32>
    %cst_42 = arith.constant 1.000000e+00 : f32
    %115 = vector.broadcast %cst_42 : f32 to vector<8x128xf32>
    %116 = arith.addf %115, %114 : vector<8x128xf32>
    %117 = arith.divf %115, %116 : vector<8x128xf32>
    %118 = vector.extract_strided_slice %97 {offsets = [0, 256], sizes = [8, 128], strides = [1, 1]} : vector<8x384xf32> to vector<8x128xf32>
    %119 = vector.extract_strided_slice %101 {offsets = [0, 256], sizes = [8, 128], strides = [1, 1]} : vector<8x384xf32> to vector<8x128xf32>
    %120 = arith.mulf %109, %119 : vector<8x128xf32>
    %121 = arith.addf %118, %120 : vector<8x128xf32>
    %122 = math.tanh %121 : vector<8x128xf32>
    %cst_43 = arith.constant 1.000000e+00 : f32
    %123 = vector.broadcast %cst_43 : f32 to vector<8x128xf32>
    %124 = arith.subf %123, %117 : vector<8x128xf32>
    %125 = arith.mulf %124, %122 : vector<8x128xf32>
    %126 = arith.mulf %117, %90 : vector<8x128xf32>
    %127 = arith.addf %125, %126 : vector<8x128xf32>
    %128 = arith.index_cast %c2_i32 : i32 to index
    %c0_44 = arith.constant 0 : index
    %c0_45 = arith.constant 0 : index
    %129 = vector.load %arg9[%128, %c0_44, %c0_45] : memref<8x8x128xf32, #tpu.memory_space<vmem>>, vector<1x8x128xf32>
    %130 = vector.shape_cast %129 : vector<1x8x128xf32> to vector<8x128xf32>
    %131 = vector.shape_cast %127 : vector<8x128xf32> to vector<1x8x128xf32>
    tpu.vector_store %arg9[%128, %c0_44, %c0_45], %131 {strides = array<i32>} : memref<8x8x128xf32, #tpu.memory_space<vmem>>, vector<1x8x128xf32>,
    %c3_i32 = arith.constant 3 : i32
    %132 = arith.index_cast %c3_i32 : i32 to index
    %c0_46 = arith.constant 0 : index
    %c0_47 = arith.constant 0 : index
    %133 = vector.load %arg11[%132, %c0_46, %c0_47] : memref<8x8x384xf32, #tpu.memory_space<vmem>>, vector<1x8x384xf32>
    %134 = vector.shape_cast %133 : vector<1x8x384xf32> to vector<8x384xf32>
    %135 = arith.truncf %127 : vector<8x128xf32> to vector<8x128xbf16>
    %cst_48 = arith.constant dense<0.000000e+00> : vector<8x384xf32>
    %136 = tpu.matmul %135, %18, %cst_48 {dimension_numbers = #tpu.dot_dimension_numbers<[1], [0], [0], [1], [0, 0, 1, 1], [], []>} : vector<8x128xbf16>, vector<128x384xbf16>, vector<8x384xf32> -> vector<8x384xf32>
    %137 = vector.broadcast %19 : vector<1x384xf32> to vector<8x384xf32>
    %138 = arith.addf %136, %137 : vector<8x384xf32>
    %139 = vector.extract_strided_slice %134 {offsets = [0, 0], sizes = [8, 128], strides = [1, 1]} : vector<8x384xf32> to vector<8x128xf32>
    %140 = vector.extract_strided_slice %138 {offsets = [0, 0], sizes = [8, 128], strides = [1, 1]} : vector<8x384xf32> to vector<8x128xf32>
    %141 = arith.addf %139, %140 : vector<8x128xf32>
    %142 = arith.negf %141 : vector<8x128xf32>
    %143 = math.exp %142 : vector<8x128xf32>
    %cst_49 = arith.constant 1.000000e+00 : f32
    %144 = vector.broadcast %cst_49 : f32 to vector<8x128xf32>
    %145 = arith.addf %144, %143 : vector<8x128xf32>
    %146 = arith.divf %144, %145 : vector<8x128xf32>
    %147 = vector.extract_strided_slice %134 {offsets = [0, 128], sizes = [8, 128], strides = [1, 1]} : vector<8x384xf32> to vector<8x128xf32>
    %148 = vector.extract_strided_slice %138 {offsets = [0, 128], sizes = [8, 128], strides = [1, 1]} : vector<8x384xf32> to vector<8x128xf32>
    %149 = arith.addf %147, %148 : vector<8x128xf32>
    %150 = arith.negf %149 : vector<8x128xf32>
    %151 = math.exp %150 : vector<8x128xf32>
    %cst_50 = arith.constant 1.000000e+00 : f32
    %152 = vector.broadcast %cst_50 : f32 to vector<8x128xf32>
    %153 = arith.addf %152, %151 : vector<8x128xf32>
    %154 = arith.divf %152, %153 : vector<8x128xf32>
    %155 = vector.extract_strided_slice %134 {offsets = [0, 256], sizes = [8, 128], strides = [1, 1]} : vector<8x384xf32> to vector<8x128xf32>
    %156 = vector.extract_strided_slice %138 {offsets = [0, 256], sizes = [8, 128], strides = [1, 1]} : vector<8x384xf32> to vector<8x128xf32>
    %157 = arith.mulf %146, %156 : vector<8x128xf32>
    %158 = arith.addf %155, %157 : vector<8x128xf32>
    %159 = math.tanh %158 : vector<8x128xf32>
    %cst_51 = arith.constant 1.000000e+00 : f32
    %160 = vector.broadcast %cst_51 : f32 to vector<8x128xf32>
    %161 = arith.subf %160, %154 : vector<8x128xf32>
    %162 = arith.mulf %161, %159 : vector<8x128xf32>
    %163 = arith.mulf %154, %127 : vector<8x128xf32>
    %164 = arith.addf %162, %163 : vector<8x128xf32>
    %165 = arith.index_cast %c3_i32 : i32 to index
    %c0_52 = arith.constant 0 : index
    %c0_53 = arith.constant 0 : index
    %166 = vector.load %arg9[%165, %c0_52, %c0_53] : memref<8x8x128xf32, #tpu.memory_space<vmem>>, vector<1x8x128xf32>
    %167 = vector.shape_cast %166 : vector<1x8x128xf32> to vector<8x128xf32>
    %168 = vector.shape_cast %164 : vector<8x128xf32> to vector<1x8x128xf32>
    tpu.vector_store %arg9[%165, %c0_52, %c0_53], %168 {strides = array<i32>} : memref<8x8x128xf32, #tpu.memory_space<vmem>>, vector<1x8x128xf32>,
    %c4_i32 = arith.constant 4 : i32
    %169 = arith.index_cast %c4_i32 : i32 to index
    %c0_54 = arith.constant 0 : index
    %c0_55 = arith.constant 0 : index
    %170 = vector.load %arg11[%169, %c0_54, %c0_55] : memref<8x8x384xf32, #tpu.memory_space<vmem>>, vector<1x8x384xf32>
    %171 = vector.shape_cast %170 : vector<1x8x384xf32> to vector<8x384xf32>
    %172 = arith.truncf %164 : vector<8x128xf32> to vector<8x128xbf16>
    %cst_56 = arith.constant dense<0.000000e+00> : vector<8x384xf32>
    %173 = tpu.matmul %172, %18, %cst_56 {dimension_numbers = #tpu.dot_dimension_numbers<[1], [0], [0], [1], [0, 0, 1, 1], [], []>} : vector<8x128xbf16>, vector<128x384xbf16>, vector<8x384xf32> -> vector<8x384xf32>
    %174 = vector.broadcast %19 : vector<1x384xf32> to vector<8x384xf32>
    %175 = arith.addf %173, %174 : vector<8x384xf32>
    %176 = vector.extract_strided_slice %171 {offsets = [0, 0], sizes = [8, 128], strides = [1, 1]} : vector<8x384xf32> to vector<8x128xf32>
    %177 = vector.extract_strided_slice %175 {offsets = [0, 0], sizes = [8, 128], strides = [1, 1]} : vector<8x384xf32> to vector<8x128xf32>
    %178 = arith.addf %176, %177 : vector<8x128xf32>
    %179 = arith.negf %178 : vector<8x128xf32>
    %180 = math.exp %179 : vector<8x128xf32>
    %cst_57 = arith.constant 1.000000e+00 : f32
    %181 = vector.broadcast %cst_57 : f32 to vector<8x128xf32>
    %182 = arith.addf %181, %180 : vector<8x128xf32>
    %183 = arith.divf %181, %182 : vector<8x128xf32>
    %184 = vector.extract_strided_slice %171 {offsets = [0, 128], sizes = [8, 128], strides = [1, 1]} : vector<8x384xf32> to vector<8x128xf32>
    %185 = vector.extract_strided_slice %175 {offsets = [0, 128], sizes = [8, 128], strides = [1, 1]} : vector<8x384xf32> to vector<8x128xf32>
    %186 = arith.addf %184, %185 : vector<8x128xf32>
    %187 = arith.negf %186 : vector<8x128xf32>
    %188 = math.exp %187 : vector<8x128xf32>
    %cst_58 = arith.constant 1.000000e+00 : f32
    %189 = vector.broadcast %cst_58 : f32 to vector<8x128xf32>
    %190 = arith.addf %189, %188 : vector<8x128xf32>
    %191 = arith.divf %189, %190 : vector<8x128xf32>
    %192 = vector.extract_strided_slice %171 {offsets = [0, 256], sizes = [8, 128], strides = [1, 1]} : vector<8x384xf32> to vector<8x128xf32>
    %193 = vector.extract_strided_slice %175 {offsets = [0, 256], sizes = [8, 128], strides = [1, 1]} : vector<8x384xf32> to vector<8x128xf32>
    %194 = arith.mulf %183, %193 : vector<8x128xf32>
    %195 = arith.addf %192, %194 : vector<8x128xf32>
    %196 = math.tanh %195 : vector<8x128xf32>
    %cst_59 = arith.constant 1.000000e+00 : f32
    %197 = vector.broadcast %cst_59 : f32 to vector<8x128xf32>
    %198 = arith.subf %197, %191 : vector<8x128xf32>
    %199 = arith.mulf %198, %196 : vector<8x128xf32>
    %200 = arith.mulf %191, %164 : vector<8x128xf32>
    %201 = arith.addf %199, %200 : vector<8x128xf32>
    %202 = arith.index_cast %c4_i32 : i32 to index
    %c0_60 = arith.constant 0 : index
    %c0_61 = arith.constant 0 : index
    %203 = vector.load %arg9[%202, %c0_60, %c0_61] : memref<8x8x128xf32, #tpu.memory_space<vmem>>, vector<1x8x128xf32>
    %204 = vector.shape_cast %203 : vector<1x8x128xf32> to vector<8x128xf32>
    %205 = vector.shape_cast %201 : vector<8x128xf32> to vector<1x8x128xf32>
    tpu.vector_store %arg9[%202, %c0_60, %c0_61], %205 {strides = array<i32>} : memref<8x8x128xf32, #tpu.memory_space<vmem>>, vector<1x8x128xf32>,
    %c5_i32 = arith.constant 5 : i32
    %206 = arith.index_cast %c5_i32 : i32 to index
    %c0_62 = arith.constant 0 : index
    %c0_63 = arith.constant 0 : index
    %207 = vector.load %arg11[%206, %c0_62, %c0_63] : memref<8x8x384xf32, #tpu.memory_space<vmem>>, vector<1x8x384xf32>
    %208 = vector.shape_cast %207 : vector<1x8x384xf32> to vector<8x384xf32>
    %209 = arith.truncf %201 : vector<8x128xf32> to vector<8x128xbf16>
    %cst_64 = arith.constant dense<0.000000e+00> : vector<8x384xf32>
    %210 = tpu.matmul %209, %18, %cst_64 {dimension_numbers = #tpu.dot_dimension_numbers<[1], [0], [0], [1], [0, 0, 1, 1], [], []>} : vector<8x128xbf16>, vector<128x384xbf16>, vector<8x384xf32> -> vector<8x384xf32>
    %211 = vector.broadcast %19 : vector<1x384xf32> to vector<8x384xf32>
    %212 = arith.addf %210, %211 : vector<8x384xf32>
    %213 = vector.extract_strided_slice %208 {offsets = [0, 0], sizes = [8, 128], strides = [1, 1]} : vector<8x384xf32> to vector<8x128xf32>
    %214 = vector.extract_strided_slice %212 {offsets = [0, 0], sizes = [8, 128], strides = [1, 1]} : vector<8x384xf32> to vector<8x128xf32>
    %215 = arith.addf %213, %214 : vector<8x128xf32>
    %216 = arith.negf %215 : vector<8x128xf32>
    %217 = math.exp %216 : vector<8x128xf32>
    %cst_65 = arith.constant 1.000000e+00 : f32
    %218 = vector.broadcast %cst_65 : f32 to vector<8x128xf32>
    %219 = arith.addf %218, %217 : vector<8x128xf32>
    %220 = arith.divf %218, %219 : vector<8x128xf32>
    %221 = vector.extract_strided_slice %208 {offsets = [0, 128], sizes = [8, 128], strides = [1, 1]} : vector<8x384xf32> to vector<8x128xf32>
    %222 = vector.extract_strided_slice %212 {offsets = [0, 128], sizes = [8, 128], strides = [1, 1]} : vector<8x384xf32> to vector<8x128xf32>
    %223 = arith.addf %221, %222 : vector<8x128xf32>
    %224 = arith.negf %223 : vector<8x128xf32>
    %225 = math.exp %224 : vector<8x128xf32>
    %cst_66 = arith.constant 1.000000e+00 : f32
    %226 = vector.broadcast %cst_66 : f32 to vector<8x128xf32>
    %227 = arith.addf %226, %225 : vector<8x128xf32>
    %228 = arith.divf %226, %227 : vector<8x128xf32>
    %229 = vector.extract_strided_slice %208 {offsets = [0, 256], sizes = [8, 128], strides = [1, 1]} : vector<8x384xf32> to vector<8x128xf32>
    %230 = vector.extract_strided_slice %212 {offsets = [0, 256], sizes = [8, 128], strides = [1, 1]} : vector<8x384xf32> to vector<8x128xf32>
    %231 = arith.mulf %220, %230 : vector<8x128xf32>
    %232 = arith.addf %229, %231 : vector<8x128xf32>
    %233 = math.tanh %232 : vector<8x128xf32>
    %cst_67 = arith.constant 1.000000e+00 : f32
    %234 = vector.broadcast %cst_67 : f32 to vector<8x128xf32>
    %235 = arith.subf %234, %228 : vector<8x128xf32>
    %236 = arith.mulf %235, %233 : vector<8x128xf32>
    %237 = arith.mulf %228, %201 : vector<8x128xf32>
    %238 = arith.addf %236, %237 : vector<8x128xf32>
    %239 = arith.index_cast %c5_i32 : i32 to index
    %c0_68 = arith.constant 0 : index
    %c0_69 = arith.constant 0 : index
    %240 = vector.load %arg9[%239, %c0_68, %c0_69] : memref<8x8x128xf32, #tpu.memory_space<vmem>>, vector<1x8x128xf32>
    %241 = vector.shape_cast %240 : vector<1x8x128xf32> to vector<8x128xf32>
    %242 = vector.shape_cast %238 : vector<8x128xf32> to vector<1x8x128xf32>
    tpu.vector_store %arg9[%239, %c0_68, %c0_69], %242 {strides = array<i32>} : memref<8x8x128xf32, #tpu.memory_space<vmem>>, vector<1x8x128xf32>,
    %c6_i32 = arith.constant 6 : i32
    %243 = arith.index_cast %c6_i32 : i32 to index
    %c0_70 = arith.constant 0 : index
    %c0_71 = arith.constant 0 : index
    %244 = vector.load %arg11[%243, %c0_70, %c0_71] : memref<8x8x384xf32, #tpu.memory_space<vmem>>, vector<1x8x384xf32>
    %245 = vector.shape_cast %244 : vector<1x8x384xf32> to vector<8x384xf32>
    %246 = arith.truncf %238 : vector<8x128xf32> to vector<8x128xbf16>
    %cst_72 = arith.constant dense<0.000000e+00> : vector<8x384xf32>
    %247 = tpu.matmul %246, %18, %cst_72 {dimension_numbers = #tpu.dot_dimension_numbers<[1], [0], [0], [1], [0, 0, 1, 1], [], []>} : vector<8x128xbf16>, vector<128x384xbf16>, vector<8x384xf32> -> vector<8x384xf32>
    %248 = vector.broadcast %19 : vector<1x384xf32> to vector<8x384xf32>
    %249 = arith.addf %247, %248 : vector<8x384xf32>
    %250 = vector.extract_strided_slice %245 {offsets = [0, 0], sizes = [8, 128], strides = [1, 1]} : vector<8x384xf32> to vector<8x128xf32>
    %251 = vector.extract_strided_slice %249 {offsets = [0, 0], sizes = [8, 128], strides = [1, 1]} : vector<8x384xf32> to vector<8x128xf32>
    %252 = arith.addf %250, %251 : vector<8x128xf32>
    %253 = arith.negf %252 : vector<8x128xf32>
    %254 = math.exp %253 : vector<8x128xf32>
    %cst_73 = arith.constant 1.000000e+00 : f32
    %255 = vector.broadcast %cst_73 : f32 to vector<8x128xf32>
    %256 = arith.addf %255, %254 : vector<8x128xf32>
    %257 = arith.divf %255, %256 : vector<8x128xf32>
    %258 = vector.extract_strided_slice %245 {offsets = [0, 128], sizes = [8, 128], strides = [1, 1]} : vector<8x384xf32> to vector<8x128xf32>
    %259 = vector.extract_strided_slice %249 {offsets = [0, 128], sizes = [8, 128], strides = [1, 1]} : vector<8x384xf32> to vector<8x128xf32>
    %260 = arith.addf %258, %259 : vector<8x128xf32>
    %261 = arith.negf %260 : vector<8x128xf32>
    %262 = math.exp %261 : vector<8x128xf32>
    %cst_74 = arith.constant 1.000000e+00 : f32
    %263 = vector.broadcast %cst_74 : f32 to vector<8x128xf32>
    %264 = arith.addf %263, %262 : vector<8x128xf32>
    %265 = arith.divf %263, %264 : vector<8x128xf32>
    %266 = vector.extract_strided_slice %245 {offsets = [0, 256], sizes = [8, 128], strides = [1, 1]} : vector<8x384xf32> to vector<8x128xf32>
    %267 = vector.extract_strided_slice %249 {offsets = [0, 256], sizes = [8, 128], strides = [1, 1]} : vector<8x384xf32> to vector<8x128xf32>
    %268 = arith.mulf %257, %267 : vector<8x128xf32>
    %269 = arith.addf %266, %268 : vector<8x128xf32>
    %270 = math.tanh %269 : vector<8x128xf32>
    %cst_75 = arith.constant 1.000000e+00 : f32
    %271 = vector.broadcast %cst_75 : f32 to vector<8x128xf32>
    %272 = arith.subf %271, %265 : vector<8x128xf32>
    %273 = arith.mulf %272, %270 : vector<8x128xf32>
    %274 = arith.mulf %265, %238 : vector<8x128xf32>
    %275 = arith.addf %273, %274 : vector<8x128xf32>
    %276 = arith.index_cast %c6_i32 : i32 to index
    %c0_76 = arith.constant 0 : index
    %c0_77 = arith.constant 0 : index
    %277 = vector.load %arg9[%276, %c0_76, %c0_77] : memref<8x8x128xf32, #tpu.memory_space<vmem>>, vector<1x8x128xf32>
    %278 = vector.shape_cast %277 : vector<1x8x128xf32> to vector<8x128xf32>
    %279 = vector.shape_cast %275 : vector<8x128xf32> to vector<1x8x128xf32>
    tpu.vector_store %arg9[%276, %c0_76, %c0_77], %279 {strides = array<i32>} : memref<8x8x128xf32, #tpu.memory_space<vmem>>, vector<1x8x128xf32>,
    %c7_i32 = arith.constant 7 : i32
    %280 = arith.index_cast %c7_i32 : i32 to index
    %c0_78 = arith.constant 0 : index
    %c0_79 = arith.constant 0 : index
    %281 = vector.load %arg11[%280, %c0_78, %c0_79] : memref<8x8x384xf32, #tpu.memory_space<vmem>>, vector<1x8x384xf32>
    %282 = vector.shape_cast %281 : vector<1x8x384xf32> to vector<8x384xf32>
    %283 = arith.truncf %275 : vector<8x128xf32> to vector<8x128xbf16>
    %cst_80 = arith.constant dense<0.000000e+00> : vector<8x384xf32>
    %284 = tpu.matmul %283, %18, %cst_80 {dimension_numbers = #tpu.dot_dimension_numbers<[1], [0], [0], [1], [0, 0, 1, 1], [], []>} : vector<8x128xbf16>, vector<128x384xbf16>, vector<8x384xf32> -> vector<8x384xf32>
    %285 = vector.broadcast %19 : vector<1x384xf32> to vector<8x384xf32>
    %286 = arith.addf %284, %285 : vector<8x384xf32>
    %287 = vector.extract_strided_slice %282 {offsets = [0, 0], sizes = [8, 128], strides = [1, 1]} : vector<8x384xf32> to vector<8x128xf32>
    %288 = vector.extract_strided_slice %286 {offsets = [0, 0], sizes = [8, 128], strides = [1, 1]} : vector<8x384xf32> to vector<8x128xf32>
    %289 = arith.addf %287, %288 : vector<8x128xf32>
    %290 = arith.negf %289 : vector<8x128xf32>
    %291 = math.exp %290 : vector<8x128xf32>
    %cst_81 = arith.constant 1.000000e+00 : f32
    %292 = vector.broadcast %cst_81 : f32 to vector<8x128xf32>
    %293 = arith.addf %292, %291 : vector<8x128xf32>
    %294 = arith.divf %292, %293 : vector<8x128xf32>
    %295 = vector.extract_strided_slice %282 {offsets = [0, 128], sizes = [8, 128], strides = [1, 1]} : vector<8x384xf32> to vector<8x128xf32>
    %296 = vector.extract_strided_slice %286 {offsets = [0, 128], sizes = [8, 128], strides = [1, 1]} : vector<8x384xf32> to vector<8x128xf32>
    %297 = arith.addf %295, %296 : vector<8x128xf32>
    %298 = arith.negf %297 : vector<8x128xf32>
    %299 = math.exp %298 : vector<8x128xf32>
    %cst_82 = arith.constant 1.000000e+00 : f32
    %300 = vector.broadcast %cst_82 : f32 to vector<8x128xf32>
    %301 = arith.addf %300, %299 : vector<8x128xf32>
    %302 = arith.divf %300, %301 : vector<8x128xf32>
    %303 = vector.extract_strided_slice %282 {offsets = [0, 256], sizes = [8, 128], strides = [1, 1]} : vector<8x384xf32> to vector<8x128xf32>
    %304 = vector.extract_strided_slice %286 {offsets = [0, 256], sizes = [8, 128], strides = [1, 1]} : vector<8x384xf32> to vector<8x128xf32>
    %305 = arith.mulf %294, %304 : vector<8x128xf32>
    %306 = arith.addf %303, %305 : vector<8x128xf32>
    %307 = math.tanh %306 : vector<8x128xf32>
    %cst_83 = arith.constant 1.000000e+00 : f32
    %308 = vector.broadcast %cst_83 : f32 to vector<8x128xf32>
    %309 = arith.subf %308, %302 : vector<8x128xf32>
    %310 = arith.mulf %309, %307 : vector<8x128xf32>
    %311 = arith.mulf %302, %275 : vector<8x128xf32>
    %312 = arith.addf %310, %311 : vector<8x128xf32>
    %313 = arith.index_cast %c7_i32 : i32 to index
    %c0_84 = arith.constant 0 : index
    %c0_85 = arith.constant 0 : index
    %314 = vector.load %arg9[%313, %c0_84, %c0_85] : memref<8x8x128xf32, #tpu.memory_space<vmem>>, vector<1x8x128xf32>
    %315 = vector.shape_cast %314 : vector<1x8x128xf32> to vector<8x128xf32>
    %316 = vector.shape_cast %312 : vector<8x128xf32> to vector<1x8x128xf32>
    tpu.vector_store %arg9[%313, %c0_84, %c0_85], %316 {strides = array<i32>} : memref<8x8x128xf32, #tpu.memory_space<vmem>>, vector<1x8x128xf32>,
    %c8_i32 = arith.constant 8 : i32
    %c0_86 = arith.constant 0 : index
    %c0_87 = arith.constant 0 : index
    %317 = vector.load %arg10[%c0_86, %c0_87] : memref<8x128xf32, #tpu.memory_space<vmem>>, vector<8x128xf32>
    tpu.vector_store %arg10[%c0_86, %c0_87], %312 {strides = array<i32>} : memref<8x128xf32, #tpu.memory_space<vmem>>, vector<8x128xf32>,
    return
  }
  func.func @transform_0(%arg0: i32, %arg1: i32) -> (i32, i32, i32) {
    %c0_i32 = arith.constant 0 : i32
    %c0_i32_0 = arith.constant 0 : i32
    return %arg1, %arg0, %c0_i32 : i32, i32, i32
  }
  func.func @transform_1(%arg0: i32, %arg1: i32) -> (i32, i32) {
    %c0_i32 = arith.constant 0 : i32
    %c0_i32_0 = arith.constant 0 : i32
    %c0_i32_1 = arith.constant 0 : i32
    return %c0_i32, %c0_i32_0 : i32, i32
  }
  func.func @transform_2(%arg0: i32, %arg1: i32) -> (i32, i32) {
    %c0_i32 = arith.constant 0 : i32
    %c0_i32_0 = arith.constant 0 : i32
    %c0_i32_1 = arith.constant 0 : i32
    return %c0_i32, %c0_i32_0 : i32, i32
  }
  func.func @transform_3(%arg0: i32, %arg1: i32) -> (i32, i32) {
    %c0_i32 = arith.constant 0 : i32
    %c0_i32_0 = arith.constant 0 : i32
    %c0_i32_1 = arith.constant 0 : i32
    return %c0_i32, %c0_i32_0 : i32, i32
  }
  func.func @transform_4(%arg0: i32, %arg1: i32) -> (i32, i32) {
    %c0_i32 = arith.constant 0 : i32
    %c0_i32_0 = arith.constant 0 : i32
    %c0_i32_1 = arith.constant 0 : i32
    return %c0_i32, %c0_i32_0 : i32, i32
  }
  func.func @transform_5(%arg0: i32, %arg1: i32) -> (i32, i32) {
    %c0_i32 = arith.constant 0 : i32
    %c0_i32_0 = arith.constant 0 : i32
    %c0_i32_1 = arith.constant 0 : i32
    return %c0_i32, %c0_i32_0 : i32, i32
  }
  func.func @transform_6(%arg0: i32, %arg1: i32) -> (i32, i32) {
    %c0_i32 = arith.constant 0 : i32
    %c0_i32_0 = arith.constant 0 : i32
    %c0_i32_1 = arith.constant 0 : i32
    return %c0_i32, %c0_i32_0 : i32, i32
  }
  func.func @transform_7(%arg0: i32, %arg1: i32) -> (i32, i32, i32) {
    %c0_i32 = arith.constant 0 : i32
    %c0_i32_0 = arith.constant 0 : i32
    return %arg1, %arg0, %c0_i32 : i32, i32, i32
  }
}

</mosaic_0001>

<bundles_post_ra>
// kernel: encoder_rnn_forward.1
= control target key start
LH: loop header
LB: loop body
LE: loop exit
PB: predicated region body
PF: predicated region fallthrough
CT: control target
= control target key end

     0   :  { %s2551_s1 = inlined_call_operand.vmem [shape: bf16[128,128], index: 1, kind: input, shape index: {}]   ;;  %s2552_s2 = inlined_call_operand.vmem [shape: f32[1,128], index: 2, kind: input, shape index: {}]   ;;  %s2553_s0 = inlined_call_operand.vmem [shape: bf16[8,8,128], index: 0, kind: input, shape index: {}]   ;;  %s2554_s3 = inlined_call_operand.vmem [shape: bf16[128,384], index: 3, kind: input, shape index: {}]   ;;  %s2555_s5 = inlined_call_operand.vmem [shape: bf16[128,384], index: 5, kind: input, shape index: {}]   ;;  %s2556_s4 = inlined_call_operand.vmem [shape: f32[1,384], index: 4, kind: input, shape index: {}]   ;;  %s2557_s6 = inlined_call_operand.vmem [shape: f32[1,384], index: 6, kind: input, shape index: {}]   ;;  %s2558_s7 = inlined_call_operand.vmem [shape: f32[8,8,128], index: 7, kind: output, shape index: {}]  }
   0x1   :  { %v1633_v0 = vld [vmem:[%s2551_s1 + $0x38] sm:$0xff]  ;;  %v1632_v1 = vld [vmem:[%s2551_s1 + $0x30] sm:$0xff]  ;;  %v1631_v2 = vld [vmem:[%s2551_s1 + $0x28] sm:$0xff] }
   0x2   :  { %131 = vmatpush.bf16.msra.mxu0 %v1633_v0  ;;  %v1630_v3 = vld [vmem:[%s2551_s1 + $0x20] sm:$0xff]  ;;  %v1629_v4 = vld [vmem:[%s2551_s1 + $0x18] sm:$0xff]  ;;  %v1628_v5 = vld [vmem:[%s2551_s1 + $0x10] sm:$0xff] }
   0x3   :  { %v1627_v6 = vld [vmem:[%s2551_s1 + $0x8] sm:$0xff]  ;;  %v1626_v7 = vld [vmem:[%s2551_s1] sm:$0xff]  ;;  %v1656_v11 = vld [vmem:[%s2554_s3 + $0xb0] sm:$0xf0] }
   0x4   :  { %v1622_v8 = vld [vmem:[%s2553_s0] sm:$0xff]  ;;  %v1623_v9 = vld [vmem:[%s2553_s0 + $0x8] sm:$0xff]  ;;  %v1495_v14 = vld [vmem:[%s2554_s3 + $0xb4] sm:$0xf0] }
   0x5   :  { %v1493_v10 = vld [vmem:[%s2554_s3 + $0xa8] sm:$0xf]  ;;  %v1655_v12 = vld [vmem:[%s2554_s3 + $0xac] sm:$0xf]  ;;  %v1501_v15 = vld [vmem:[%s2554_s3 + $0xb0] sm:$0xf] }
   0x6   :  { %132 = vmatpush.bf16.msra.mxu0 %v1632_v1  ;;  %v1494_v13 = vor.u32 %v1656_v11, %v1493_v10  ;;  %v1657_v16 = vld [vmem:[%s2554_s3 + $0xb8] sm:$0xf0]  ;;  %v1498_v17 = vor.u32 %v1655_v12, %v1495_v14  ;;  %v1589_v19 = vld [vmem:[%s2555_s5 + $0xa8] sm:$0xf]  ;;  %v1680_v20 = vld [vmem:[%s2555_s5 + $0xb0] sm:$0xf0] }
   0x7   :  { %v1502_v18 = vor.u32 %v1657_v16, %v1501_v15  ;;  %v1481_v21 = vld [vmem:[%s2554_s3 + $0x90] sm:$0xf]  ;;  %v1862_v22 = vor.u32 %v1680_v20, %v1589_v19  ;;  %v1653_v23 = vld [vmem:[%s2554_s3 + $0x98] sm:$0xf0]  ;;  %v1652_v24 = vld [vmem:[%s2554_s3 + $0x94] sm:$0xf] }
   0x8   :  { %332 = vmatpush.bf16.msra.mxu1 %v1494_v13  ;;  %v1483_v25 = vld [vmem:[%s2554_s3 + $0x9c] sm:$0xf0]  ;;  %361 = vmatpush.bf16.msra.mxu2 %v1498_v17  ;;  %v1482_v26 = vor.u32 %v1653_v23, %v1481_v21  ;;  %v1489_v28 = vld [vmem:[%s2554_s3 + $0x98] sm:$0xf]  ;;  %v1654_v29 = vld [vmem:[%s2554_s3 + $0xa0] sm:$0xf0] }
   0x9   :  { %390 = vmatpush.bf16.msra.mxu3 %v1502_v18  ;;  %v1486_v27 = vor.u32 %v1652_v24, %v1483_v25  ;;  %v1577_v30 = vld [vmem:[%s2555_s5 + $0x90] sm:$0xf]  ;;  %v1490_v31 = vor.u32 %v1654_v29, %v1489_v28  ;;  %v1677_v32 = vld [vmem:[%s2555_s5 + $0x98] sm:$0xf0]  ;;  %v1469_v33 = vld [vmem:[%s2554_s3 + $0x78] sm:$0xf] }
   0xa   :  { %133 = vmatpush.bf16.msra.mxu0 %v1631_v2  ;;  %v1650_v34 = vld [vmem:[%s2554_s3 + $0x80] sm:$0xf0]  ;;  %v1892_v35 = vor.u32 %v1677_v32, %v1577_v30  ;;  %v1649_v36 = vld [vmem:[%s2554_s3 + $0x7c] sm:$0xf]  ;;  %v1471_v37 = vld [vmem:[%s2554_s3 + $0x84] sm:$0xf0] }
   0xb   :  { %v1477_v38 = vld [vmem:[%s2554_s3 + $0x80] sm:$0xf]  ;;  %v1470_v39 = vor.u32 %v1650_v34, %v1469_v33  ;;  %v1651_v40 = vld [vmem:[%s2554_s3 + $0x88] sm:$0xf0]  ;;  %v1565_v41 = vld [vmem:[%s2555_s5 + $0x78] sm:$0xf]  ;;  %v1474_v43 = vor.u32 %v1649_v36, %v1471_v37 }
   0xc   :  { %333 = vmatpush.bf16.msra.mxu1 %v1482_v26  ;;  %v1674_v42 = vld [vmem:[%s2555_s5 + $0x80] sm:$0xf0]  ;;  %362 = vmatpush.bf16.msra.mxu2 %v1486_v27  ;;  %v1478_v44 = vor.u32 %v1651_v40, %v1477_v38  ;;  %v1457_v45 = vld [vmem:[%s2554_s3 + $0x60] sm:$0xf]  ;;  %v1647_v46 = vld [vmem:[%s2554_s3 + $0x68] sm:$0xf0] }
   0xd   :  { %391 = vmatpush.bf16.msra.mxu3 %v1490_v31  ;;  %v1919_v47 = vor.u32 %v1674_v42, %v1565_v41  ;;  %v1646_v48 = vld [vmem:[%s2554_s3 + $0x64] sm:$0xf]  ;;  %v1459_v49 = vld [vmem:[%s2554_s3 + $0x6c] sm:$0xf0]  ;;  %v1465_v50 = vld [vmem:[%s2554_s3 + $0x68] sm:$0xf]  ;;  %v1458_v54 = vor.u32 %v1647_v46, %v1457_v45 }
   0xe   :  { %134 = vmatpush.bf16.msra.mxu0 %v1630_v3  ;;  %v1648_v51 = vld [vmem:[%s2554_s3 + $0x70] sm:$0xf0]  ;;  %v1553_v52 = vld [vmem:[%s2555_s5 + $0x60] sm:$0xf]  ;;  %v1671_v53 = vld [vmem:[%s2555_s5 + $0x68] sm:$0xf0]  ;;  %v1462_v56 = vor.u32 %v1646_v48, %v1459_v49 }
   0xf   :  { %v1624_v55 = vld [vmem:[%s2553_s0 + $0x10] sm:$0xff]  ;;  %v1445_v57 = vld [vmem:[%s2554_s3 + $0x48] sm:$0xf]  ;;  %v1466_v59 = vor.u32 %v1648_v51, %v1465_v50  ;;  %v1949_v60 = vor.u32 %v1671_v53, %v1553_v52  ;;  %v1643_v61 = vld [vmem:[%s2554_s3 + $0x4c] sm:$0xf]  ;;  %v1764_v49 = vmov 0.0|0.0  }
  0x10   :  { %334 = vmatpush.bf16.msra.mxu1 %v1470_v39  ;;  %363 = vmatpush.bf16.msra.mxu2 %v1474_v43  ;;  %v1644_v58 = vld [vmem:[%s2554_s3 + $0x50] sm:$0xf0]  ;;  %v1447_v62 = vld [vmem:[%s2554_s3 + $0x54] sm:$0xf0]  ;;  %v1453_v63 = vld [vmem:[%s2554_s3 + $0x50] sm:$0xf] }
  0x11   :  { %392 = vmatpush.bf16.msra.mxu3 %v1478_v44  ;;  %v1645_v0 = vld [vmem:[%s2554_s3 + $0x58] sm:$0xf0]  ;;  %v1541_v1 = vld [vmem:[%s2555_s5 + $0x48] sm:$0xf]  ;;  %v1668_v2 = vld [vmem:[%s2555_s5 + $0x50] sm:$0xf0]  ;;  %v1446_v3 = vor.u32 %v1644_v58, %v1445_v57 }
  0x12   :  { %135 = vmatpush.bf16.msra.mxu0 %v1629_v4  ;;  %v1450_v4 = vor.u32 %v1643_v61, %v1447_v62  ;;  %v1640_v10 = vld [vmem:[%s2554_s3 + $0x34] sm:$0xf]  ;;  %v1435_v12 = vld [vmem:[%s2554_s3 + $0x3c] sm:$0xf0]  ;;  %v1441_v13 = vld [vmem:[%s2554_s3 + $0x38] sm:$0xf] }
  0x13   :  { %v1642_v14 = vld [vmem:[%s2554_s3 + $0x40] sm:$0xf0]  ;;  %v1438_v15 = vor.u32 %v1640_v10, %v1435_v12  ;;  %v1529_v17 = vld [vmem:[%s2555_s5 + $0x30] sm:$0xf]  ;;  %v1665_v18 = vld [vmem:[%s2555_s5 + $0x38] sm:$0xf0] }
  0x14   :  { %335 = vmatpush.bf16.msra.mxu1 %v1458_v54  ;;  %364 = vmatpush.bf16.msra.mxu2 %v1462_v56  ;;  %v1442_v16 = vor.u32 %v1642_v14, %v1441_v13  ;;  %v1421_v19 = vld [vmem:[%s2554_s3 + $0x18] sm:$0xf]  ;;  %v2003_v20 = vor.u32 %v1665_v18, %v1529_v17  ;;  %v1638_v21 = vld [vmem:[%s2554_s3 + $0x20] sm:$0xf0]  ;;  %v1637_v23 = vld [vmem:[%s2554_s3 + $0x1c] sm:$0xf] }
  0x15   :  { %393 = vmatpush.bf16.msra.mxu3 %v1466_v59  ;;  %v1423_v24 = vld [vmem:[%s2554_s3 + $0x24] sm:$0xf0]  ;;  %v1422_v25 = vor.u32 %v1638_v21, %v1421_v19  ;;  %v1429_v27 = vld [vmem:[%s2554_s3 + $0x20] sm:$0xf]  ;;  %v1639_v28 = vld [vmem:[%s2554_s3 + $0x28] sm:$0xf0] }
  0x16   :  { %136 = vmatpush.bf16.msra.mxu0 %v1628_v5  ;;  %v1454_v5 = vor.u32 %v1645_v0, %v1453_v63  ;;  %v1426_v26 = vor.u32 %v1637_v23, %v1423_v24  ;;  %v1517_v29 = vld [vmem:[%s2555_s5 + $0x18] sm:$0xf]  ;;  %v1430_v30 = vor.u32 %v1639_v28, %v1429_v27  ;;  %v1662_v31 = vld [vmem:[%s2555_s5 + $0x20] sm:$0xf0]  ;;  %v1409_v33 = vld [vmem:[%s2554_s3] sm:$0xf] }
  0x17   :  { %v2027_v32 = vor.u32 %v1662_v31, %v1517_v29  ;;  %v1635_v34 = vld [vmem:[%s2554_s3 + $0x8] sm:$0xf0]  ;;  %v1634_v36 = vld [vmem:[%s2554_s3 + $0x4] sm:$0xf]  ;;  %v1411_v38 = vld [vmem:[%s2554_s3 + $0xc] sm:$0xf0] }
  0x18   :  { %336 = vmatpush.bf16.msra.mxu1 %v1446_v3  ;;  %365 = vmatpush.bf16.msra.mxu2 %v1450_v4  ;;  %v1410_v37 = vor.u32 %v1635_v34, %v1409_v33  ;;  %v1417_v39 = vld [vmem:[%s2554_s3 + $0x8] sm:$0xf]  ;;  %v1636_v40 = vld [vmem:[%s2554_s3 + $0x10] sm:$0xf0]  ;;  %v1414_v41 = vor.u32 %v1634_v36, %v1411_v38  ;;  %v1505_v43 = vld [vmem:[%s2555_s5] sm:$0xf] }
  0x19   :  { %394 = vmatpush.bf16.msra.mxu3 %v1454_v5  ;;  %v1418_v42 = vor.u32 %v1636_v40, %v1417_v39  ;;  %v1659_v44 = vld [vmem:[%s2555_s5 + $0x8] sm:$0xf0]  ;;  %v1591_v48 = vld [vmem:[%s2555_s5 + $0xb4] sm:$0xf0]  ;;  %v1676_v51 = vld [vmem:[%s2555_s5 + $0x94] sm:$0xf] }
  0x1a   :  { %137 = vmatpush.bf16.msra.mxu0 %v1627_v6  ;;  %v1970_v6 = vor.u32 %v1668_v2, %v1541_v1  ;;  %v2054_v45 = vor.u32 %v1659_v44, %v1505_v43  ;;  %v1679_v46 = vld [vmem:[%s2555_s5 + $0xac] sm:$0xf]  ;;  %v1579_v52 = vld [vmem:[%s2555_s5 + $0x9c] sm:$0xf0]  ;;  %v1597_v54 = vld [vmem:[%s2555_s5 + $0xb0] sm:$0xf] }
  0x1b   :  { %v2065_v50 = vor.u32 %v1679_v46, %v1591_v48  ;;  %v2076_v53 = vor.u32 %v1676_v51, %v1579_v52  ;;  %v1673_v57 = vld [vmem:[%s2555_s5 + $0x7c] sm:$0xf]  ;;  %v1567_v58 = vld [vmem:[%s2555_s5 + $0x84] sm:$0xf0]  ;;  %v1585_v62 = vld [vmem:[%s2555_s5 + $0x98] sm:$0xf] }
  0x1c   :  { %366 = vmatpush.bf16.msra.mxu2 %v1438_v15  ;;  %v2098_v59 = vor.u32 %v1673_v57, %v1567_v58  ;;  %v1678_v63 = vld [vmem:[%s2555_s5 + $0xa0] sm:$0xf0]  ;;  %v1555_v2 = vld [vmem:[%s2555_s5 + $0x6c] sm:$0xf0]  ;;  %v2124_v4 = vld [vmem:[%s2552_s2] ss:$0 sm:$0xff] }
  0x1d   :  { %395 = vmatpush.bf16.msra.mxu3 %v1442_v16  ;;  %v1670_v0 = vld [vmem:[%s2555_s5 + $0x64] sm:$0xf]  ;;  %v2112_v1 = vor.u32 %v1678_v63, %v1585_v62  ;;  %v1573_v10 = vld [vmem:[%s2555_s5 + $0x80] sm:$0xf]  ;;  %v1667_v13 = vld [vmem:[%s2555_s5 + $0x4c] sm:$0xf] }
  0x1e   :  { %138 = vmatpush.bf16.msra.mxu0 %v1626_v7  ;;  %v1625_v7 = vld [vmem:[%s2553_s0 + $0x18] sm:$0xff]  ;;  %v2117_v3 = vor.u32 %v1670_v0, %v1555_v2  ;;  %v1561_v17 = vld [vmem:[%s2555_s5 + $0x68] sm:$0xf]  ;;  %v1672_v18 = vld [vmem:[%s2555_s5 + $0x70] sm:$0xf0] }
  0x1f   :  { %v1543_v14 = vld [vmem:[%s2555_s5 + $0x54] sm:$0xf0]  ;;  %v1664_v19 = vld [vmem:[%s2555_s5 + $0x34] sm:$0xf]  ;;  %v2160_v21 = vor.u32 %v1672_v18, %v1561_v17  ;;  %v1531_v23 = vld [vmem:[%s2555_s5 + $0x3c] sm:$0xf0] }
  0x20   :  { %367 = vmatpush.bf16.msra.mxu2 %v1426_v26  ;;  %v2146_v15 = vor.u32 %v1667_v13, %v1543_v14  ;;  %v2165_v24 = vor.u32 %v1664_v19, %v1531_v23  ;;  %v1549_v29 = vld [vmem:[%s2555_s5 + $0x50] sm:$0xf]  ;;  %v1661_v33 = vld [vmem:[%s2555_s5 + $0x1c] sm:$0xf]  ;;  %v1519_v34 = vld [vmem:[%s2555_s5 + $0x24] sm:$0xf0] }
  0x21   :  { %139 = vmatmul.bf16.vlgmr.msra.gmra.mxu0 %v1622_v8  ;;  %v1433_v8 = vld [vmem:[%s2554_s3 + $0x30] sm:$0xf]  ;;  %396 = vmatpush.bf16.msra.mxu3 %v1430_v30  ;;  %v1669_v30 = vld [vmem:[%s2555_s5 + $0x58] sm:$0xf0]  ;;  %v1537_v36 = vld [vmem:[%s2555_s5 + $0x38] sm:$0xf] }
  0x22   :  { %616 = vmatpush.bf16.msrb.mxu0 %v1862_v22  ;;  %v2181_v31 = vor.u32 %v1669_v30, %v1549_v29  ;;  %v1666_v38 = vld [vmem:[%s2555_s5 + $0x40] sm:$0xf0]  ;;  %v1507_v40 = vld [vmem:[%s2555_s5 + $0xc] sm:$0xf0]  ;;  %v1525_v43 = vld [vmem:[%s2555_s5 + $0x20] sm:$0xf] }
  0x23   :  { %v1658_v39 = vld [vmem:[%s2555_s5 + $0x4] sm:$0xf]  ;;  %v1663_v44 = vld [vmem:[%s2555_s5 + $0x28] sm:$0xf0]  ;;  %v1513_v51 = vld [vmem:[%s2555_s5 + $0x8] sm:$0xf] }
  0x24   :  { %368 = vmatpush.bf16.msra.mxu2 %v1414_v41  ;;  %v2214_v46 = vor.u32 %v1658_v39, %v1507_v40  ;;  %v2218_v48 = vor.u32 %v1663_v44, %v1525_v43  ;;  %v1660_v52 = vld [vmem:[%s2555_s5 + $0x10] sm:$0xf0]  ;;  %v475_v29 = vld [vmem:[%s2557_s6] sm:$0x7] }
  0x25   :  { %397 = vmatpush.bf16.msra.mxu3 %v1418_v42  ;;  %v2205_v42 = vor.u32 %v1666_v38, %v1537_v36  ;;  %v2307_v39 = vperm.slane %v475_v29, 0 }
  0x26   :  { %617 = vmatpush.bf16.msrb.mxu0 %v1892_v35 }
  0x29   :  { %708 = vmatpush.bf16.msrb.mxu3 %v1862_v22 }
  0x2a   :  { %618 = vmatpush.bf16.msrb.mxu0 %v1919_v47 }
  0x2d   :  { %709 = vmatpush.bf16.msrb.mxu3 %v1892_v35 }
  0x2e   :  { %619 = vmatpush.bf16.msrb.mxu0 %v1949_v60 }
  0x31   :  { %144 = vmatmul.bf16.gmra.mxu0 %v1623_v9  ;;  %v1641_v9 = vld [vmem:[%s2554_s3 + $0x38] sm:$0xf0]  ;;  %710 = vmatpush.bf16.msrb.mxu3 %v1919_v47 }
  0x32   :  { %620 = vmatpush.bf16.msrb.mxu0 %v1970_v6  ;;  %v1434_v11 = vor.u32 %v1641_v9, %v1433_v8 }
  0x34   :  { %337 = vmatpush.bf16.msra.mxu1 %v1434_v11  ;;  %v1675_v11 = vld [vmem:[%s2555_s5 + $0x88] sm:$0xf0] }
  0x35   :  { %711 = vmatpush.bf16.msrb.mxu3 %v1949_v60  ;;  %v2137_v12 = vor.u32 %v1675_v11, %v1573_v10 }
  0x36   :  { %621 = vmatpush.bf16.msrb.mxu0 %v2003_v20 }
  0x38   :  { %338 = vmatpush.bf16.msra.mxu1 %v1422_v25 }
  0x39   :  { %712 = vmatpush.bf16.msrb.mxu3 %v1970_v6 }
  0x3a   :  { %622 = vmatpush.bf16.msrb.mxu0 %v2027_v32 }
  0x3c   :  { %339 = vmatpush.bf16.msra.mxu1 %v1410_v37  ;;  %v2193_v37 = vor.u32 %v1661_v33, %v1519_v34 }
  0x3d   :  { %713 = vmatpush.bf16.msrb.mxu3 %v2003_v20 }
  0x3e   :  { %623 = vmatpush.bf16.msrb.mxu0 %v2054_v45 }
  0x40   :  { %629 = vmatpush.bf16.msrb.mxu1 %v2065_v50 }
  0x41   :  { %149 = vmatmul.bf16.gmra.mxu0 %v1624_v55  ;;  %v1681_v55 = vld [vmem:[%s2555_s5 + $0xb8] sm:$0xf0]  ;;  %714 = vmatpush.bf16.msrb.mxu3 %v2027_v32 }
  0x42   :  { %721 = vmatpush.bf16.msra.mxu0 %v2065_v50  ;;  %v2088_v56 = vor.u32 %v1681_v55, %v1597_v54  ;;  %v2230_v54 = vor.u32 %v1660_v52, %v1513_v51 }
  0x44   :  { %630 = vmatpush.bf16.msrb.mxu1 %v2076_v53  ;;  %642 = vmatpush.bf16.msrb.mxu2 %v2088_v56 }
  0x45   :  { %715 = vmatpush.bf16.msrb.mxu3 %v2054_v45 }
  0x46   :  { %722 = vmatpush.bf16.msra.mxu0 %v2076_v53 }
  0x48   :  { %631 = vmatpush.bf16.msrb.mxu1 %v2098_v59  ;;  %643 = vmatpush.bf16.msrb.mxu2 %v2112_v1 }
  0x4a   :  { %723 = vmatpush.bf16.msra.mxu0 %v2098_v59 }
  0x4c   :  { %632 = vmatpush.bf16.msrb.mxu1 %v2117_v3  ;;  %644 = vmatpush.bf16.msrb.mxu2 %v2137_v12 }
  0x4e   :  { %724 = vmatpush.bf16.msra.mxu0 %v2117_v3 }
  0x50   :  { %633 = vmatpush.bf16.msrb.mxu1 %v2146_v15  ;;  %645 = vmatpush.bf16.msrb.mxu2 %v2160_v21 }
  0x51   :  { %154 = vmatmul.bf16.gmra.mxu0 %v1625_v7 }
  0x52   :  { %725 = vmatpush.bf16.msra.mxu0 %v2146_v15 }
  0x54   :  { %634 = vmatpush.bf16.msrb.mxu1 %v2165_v24  ;;  %646 = vmatpush.bf16.msrb.mxu2 %v2181_v31 }
  0x56   :  { %726 = vmatpush.bf16.msra.mxu0 %v2165_v24 }
  0x58   :  { %635 = vmatpush.bf16.msrb.mxu1 %v2193_v37  ;;  %647 = vmatpush.bf16.msrb.mxu2 %v2205_v42 }
  0x5a   :  { %727 = vmatpush.bf16.msra.mxu0 %v2193_v37 }
  0x5c   :  { %636 = vmatpush.bf16.msrb.mxu1 %v2214_v46  ;;  %648 = vmatpush.bf16.msrb.mxu2 %v2218_v48 }
  0x5e   :  { %728 = vmatpush.bf16.msra.mxu0 %v2214_v46 }
  0x60   :  { %649 = vmatpush.bf16.msrb.mxu2 %v2230_v54 }
  0x61   :  { %624 = vmatmul.bf16.vlgmr.msrb.gmra.mxu0 %v1764_v49 }
  0x62   :  { %827 = vmatpush.bf16.msrb.mxu0 %v2088_v56 }
  0x66   :  { %828 = vmatpush.bf16.msrb.mxu0 %v2112_v1 }
  0x6a   :  { %829 = vmatpush.bf16.msrb.mxu0 %v2137_v12 }
  0x6e   :  { %830 = vmatpush.bf16.msrb.mxu0 %v2160_v21 }
  0x72   :  { %831 = vmatpush.bf16.msrb.mxu0 %v2181_v31 }
  0x76   :  { %832 = vmatpush.bf16.msrb.mxu0 %v2205_v42 }
  0x7a   :  { %833 = vmatpush.bf16.msrb.mxu0 %v2218_v48 }
  0x7e   :  { %834 = vmatpush.bf16.msrb.mxu0 %v2230_v54 }
  0x9e   :  { %v140_v61 = vpop.f32.mrf.mxu0 }
  0x9f   :  { %v141_v7 = vadd.f32 %v2124_v4, %v140_v61 }
  0xa6   :  { %v142_v5 = vpop.f32.mrf.mxu0 }
  0xa7   :  { %v143_v8 = vadd.f32 %v2124_v4, %v142_v5 }
  0xa9   :  { %v160_v9 = vpack.c.bf16 %v143_v8, %v141_v7  ;;  %v196_v8 = vld [vmem:[%s2556_s4] sm:$0x7] }
  0xaa   :  { %v198_v10 = vperm.slane %v196_v8, 0  ;;  %v2288_v17 = vperm.slane %v196_v8, 2 }
  0xab   :  { %340 = vmatmul.bf16.vlgmr.msra.gmra.mxu1 %v160_v9  ;;  %369 = vmatmul.bf16.vlgmr.msra.gmra.mxu2 %v160_v9 }
  0xac   :  { %398 = vmatmul.bf16.vlgmr.msra.gmra.mxu3 %v160_v9  ;;  %734 = vmatpush.bf16.msra.mxu1 %v2088_v56 }
  0xad   :  { %814 = vmatpush.bf16.msra.mxu3 %v2065_v50  ;;  %801 = vmatpush.bf16.msra.mxu2 %v1862_v22 }
  0xae   :  { %v145_v16 = vpop.f32.mrf.mxu0 }
  0xaf   :  { %v146_v26 = vadd.f32 %v2124_v4, %v145_v16  ;;  %v199_v16 = vperm.slane %v196_v8, 1 }
  0xb0   :  { %735 = vmatpush.bf16.msra.mxu1 %v2112_v1 }
  0xb1   :  { %815 = vmatpush.bf16.msra.mxu3 %v2076_v53  ;;  %802 = vmatpush.bf16.msra.mxu2 %v1892_v35 }
  0xb4   :  { %736 = vmatpush.bf16.msra.mxu1 %v2137_v12 }
  0xb5   :  { %816 = vmatpush.bf16.msra.mxu3 %v2098_v59  ;;  %803 = vmatpush.bf16.msra.mxu2 %v1919_v47 }
  0xb6   :  { %v147_v25 = vpop.f32.mrf.mxu0 }
  0xb7   :  { %v148_v27 = vadd.f32 %v2124_v4, %v147_v25 }
  0xb8   :  { %737 = vmatpush.bf16.msra.mxu1 %v2160_v21 }
  0xb9   :  { %v161_v28 = vpack.c.bf16 %v148_v27, %v146_v26  ;;  %817 = vmatpush.bf16.msra.mxu3 %v2117_v3  ;;  %804 = vmatpush.bf16.msra.mxu2 %v1949_v60 }
  0xbb   :  { %345 = vmatmul.bf16.gmra.mxu1 %v161_v28  ;;  %374 = vmatmul.bf16.gmra.mxu2 %v161_v28 }
  0xbc   :  { %403 = vmatmul.bf16.gmra.mxu3 %v161_v28  ;;  %738 = vmatpush.bf16.msra.mxu1 %v2181_v31 }
  0xbd   :  { %818 = vmatpush.bf16.msra.mxu3 %v2146_v15  ;;  %805 = vmatpush.bf16.msra.mxu2 %v1970_v6 }
  0xbe   :  { %v150_v41 = vpop.f32.mrf.mxu0 }
  0xbf   :  { %v151_v57 = vadd.f32 %v2124_v4, %v150_v41 }
  0xc0   :  { %739 = vmatpush.bf16.msra.mxu1 %v2205_v42 }
  0xc1   :  { %819 = vmatpush.bf16.msra.mxu3 %v2165_v24  ;;  %806 = vmatpush.bf16.msra.mxu2 %v2003_v20 }
  0xc4   :  { %740 = vmatpush.bf16.msra.mxu1 %v2218_v48 }
  0xc5   :  { %820 = vmatpush.bf16.msra.mxu3 %v2193_v37  ;;  %807 = vmatpush.bf16.msra.mxu2 %v2027_v32 }
  0xc6   :  { %v152_v55 = vpop.f32.mrf.mxu0 }
  0xc7   :  { %v153_v58 = vadd.f32 %v2124_v4, %v152_v55 }
  0xc8   :  { %741 = vmatpush.bf16.msra.mxu1 %v2230_v54 }
  0xc9   :  { %v162_v61 = vpack.c.bf16 %v153_v58, %v151_v57  ;;  %821 = vmatpush.bf16.msra.mxu3 %v2214_v46  ;;  %808 = vmatpush.bf16.msra.mxu2 %v2054_v45 }
  0xcb   :  { %350 = vmatmul.bf16.gmra.mxu1 %v162_v61  ;;  %379 = vmatmul.bf16.gmra.mxu2 %v162_v61 }
  0xcc   :  { %408 = vmatmul.bf16.gmra.mxu3 %v162_v61 }
  0xce   :  { %v155_v62 = vpop.f32.mrf.mxu0 }
  0xcf   :  { %v156_v0 = vadd.f32 %v2124_v4, %v155_v62 }
  0xd6   :  { %v157_v63 = vpop.f32.mrf.mxu0 }
  0xd7   :  { %v158_v2 = vadd.f32 %v2124_v4, %v157_v63 }
  0xd9   :  { %v163_v5 = vpack.c.bf16 %v158_v2, %v156_v0 }
  0xdb   :  { %355 = vmatmul.bf16.gmra.mxu1 %v163_v5  ;;  %384 = vmatmul.bf16.gmra.mxu2 %v163_v5 }
  0xdc   :  { %413 = vmatmul.bf16.gmra.mxu3 %v163_v5 }
  0xeb   :  { %637 = vmatmul.bf16.vlgmr.msrb.gmra.mxu1 %v1764_v49  ;;  %650 = vmatmul.bf16.vlgmr.msrb.gmra.mxu2 %v1764_v49  ;;  %v625_v49 = vpop.f32.mrf.mxu0 }
  0xec   :  { %894 = vmatpush.bf16.msrb.mxu1 %v1862_v22  ;;  %907 = vmatpush.bf16.msrb.mxu2 %v2065_v50  ;;  %v626_v41 = vadd.f32 %v625_v49, %v2307_v39 }
  0xf0   :  { %895 = vmatpush.bf16.msrb.mxu1 %v1892_v35  ;;  %908 = vmatpush.bf16.msrb.mxu2 %v2076_v53 }
  0xf3   :  { %v627_v4 = vpop.f32.mrf.mxu0 }
  0xf4   :  { %896 = vmatpush.bf16.msrb.mxu1 %v1919_v47  ;;  %909 = vmatpush.bf16.msrb.mxu2 %v2098_v59 }
  0xf8   :  { %897 = vmatpush.bf16.msrb.mxu1 %v1949_v60  ;;  %910 = vmatpush.bf16.msrb.mxu2 %v2117_v3 }
  0xfc   :  { %898 = vmatpush.bf16.msrb.mxu1 %v1970_v6  ;;  %911 = vmatpush.bf16.msrb.mxu2 %v2146_v15 }
 0x100   :  { %899 = vmatpush.bf16.msrb.mxu1 %v2003_v20  ;;  %912 = vmatpush.bf16.msrb.mxu2 %v2165_v24 }
 0x104   :  { %900 = vmatpush.bf16.msrb.mxu1 %v2027_v32  ;;  %913 = vmatpush.bf16.msrb.mxu2 %v2193_v37 }
 0x108   :  { %901 = vmatpush.bf16.msrb.mxu1 %v2054_v45  ;;  %914 = vmatpush.bf16.msrb.mxu2 %v2214_v46 }
 0x128   :  { %v341_v7 = vpop.f32.mrf.mxu1 }
 0x129   :  { %v342_v40 = vadd.f32 %v341_v7, %v198_v10 }
 0x12b   :  { %v655_v58 = vadd.f32 %v626_v41, %v342_v40 }
 0x12d   :  { %v1599_v61 = vmul.f32 -1.442695, %v655_v58  ;;  %v2338_v58 = vperm.slane %v475_v29, 1 }
 0x12e   :  { %v370_v9 = vpop.f32.mrf.mxu2 }
 0x12f   :  { %v2284_v11 = vpop.f32.mrf.mxu3  ;;  %1684 = vpow2.f32 %v1599_v61 }
 0x130   :  { %v343_v13 = vpop.f32.mrf.mxu1 }
 0x131   :  { %v2286_v14 = vadd.f32 %v343_v13, %v198_v10 }
 0x135   :  { %v1685_v13 = vpop.eup %1684 }
 0x136   :  { %v372_v18 = vpop.f32.mrf.mxu2 }
 0x137   :  { %v2290_v19 = vadd.f32 %v372_v18, %v199_v16  ;;  %v401_v23 = vpop.f32.mrf.mxu3 }
 0x138   :  { %v2293_v25 = vadd.f32 %v401_v23, %v2288_v17  ;;  %v346_v26 = vpop.f32.mrf.mxu1 }
 0x139   :  { %v2295_v27 = vadd.f32 %v346_v26, %v198_v10 }
 0x13e   :  { %v375_v28 = vpop.f32.mrf.mxu2 }
 0x13f   :  { %v2300_v30 = vadd.f32 %v375_v28, %v199_v16  ;;  %v404_v33 = vpop.f32.mrf.mxu3  ;;  %v659_v28 = vadd.f32 1.0, %v1685_v13 }
 0x140   :  { %v2303_v34 = vadd.f32 %v404_v33, %v2288_v17  ;;  %v348_v36 = vpop.f32.mrf.mxu1 }
 0x141   :  { %v2305_v38 = vadd.f32 %v348_v36, %v198_v10  ;;  %1686 = vrcp.f32 %v659_v28  ;;  %vm665_vm1 = vweird.f32 %v659_v28 }
 0x146   :  { %v377_v43 = vpop.f32.mrf.mxu2 }
 0x147   :  { %v2310_v44 = vadd.f32 %v377_v43, %v199_v16  ;;  %v406_v51 = vpop.f32.mrf.mxu3 }
 0x148   :  { %v2313_v52 = vadd.f32 %v406_v51, %v2288_v17  ;;  %v351_v55 = vpop.f32.mrf.mxu1 }
 0x149   :  { %v2315_v57 = vadd.f32 %v351_v55, %v198_v10  ;;  %v1687_v55 = vpop.eup %1686 }
 0x14a   :  { %vm666_vm0 = vweird.f32 %v1687_v55 }
 0x14b   :  { %vm667_vm2 = vmor %vm665_vm1, %vm666_vm0 }
 0x14e   :  { %v380_v62 = vpop.f32.mrf.mxu2 }
 0x14f   :  { %v2317_v63 = vadd.f32 %v380_v62, %v199_v16  ;;  %v409_v0 = vpop.f32.mrf.mxu3 }
 0x150   :  { %v2320_v2 = vadd.f32 %v409_v0, %v2288_v17  ;;  %v353_v5 = vpop.f32.mrf.mxu1 }
 0x151   :  { %v2322_v49 = vadd.f32 %v353_v5, %v198_v10  ;;  %v661_v5 = vmul.f32 %v1687_v55, %v659_v28 }
 0x156   :  { %v382_v4 = vpop.f32.mrf.mxu2 }
 0x157   :  { %v2324_v7 = vadd.f32 %v382_v4, %v199_v16  ;;  %v411_v8 = vpop.f32.mrf.mxu3  ;;  %v371_v4 = vadd.f32 %v370_v9, %v199_v16 }
 0x158   :  { %v2327_v18 = vadd.f32 %v411_v8, %v2288_v17  ;;  %v356_v23 = vpop.f32.mrf.mxu1 }
 0x159   :  { %v2329_v26 = vadd.f32 %v356_v23, %v198_v10  ;;  %v662_v23 = vsub.f32 1.0, %v661_v5 }
 0x15a   :  { %2559 = vst [vmem:[#allocation4_spill] sm:$0xff] %v2327_v18 }
 0x15b   :  { %2560 = vst [vmem:[#allocation5_spill] sm:$0xff] %v2329_v26  ;;  %v671_v26 = vand.u32 2147483648, %v659_v28 }
 0x15e   :  { %v385_v33 = vpop.f32.mrf.mxu2 }
 0x15f   :  { %v2331_v36 = vadd.f32 %v385_v33, %v199_v16  ;;  %v414_v40 = vpop.f32.mrf.mxu3 }
 0x160   :  { %v2334_v41 = vadd.f32 %v414_v40, %v2288_v17  ;;  %v358_v43 = vpop.f32.mrf.mxu1  ;;  %v663_v40 = vmul.f32 %v1687_v55, %v662_v23 }
 0x161   :  { %2561 = vst [vmem:[#allocation6_spill] sm:$0xff] %v2331_v36  ;;  %v2336_v51 = vadd.f32 %v358_v43, %v198_v10  ;;  %v2343_v10 = vperm.slane %v475_v29, 2  ;;  %v400_v29 = vadd.f32 %v2284_v11, %v2288_v17 }
 0x162   :  { %2562 = vst [vmem:[#allocation7_spill] sm:$0xff] %v2334_v41  ;;  %v664_v43 = vadd.f32 %v1687_v55, %v663_v40 }
 0x163   :  { %2563 = vst [vmem:[#allocation8_spill] sm:$0xff] %v2336_v51 }
 0x166   :  { %v387_v61 = vpop.f32.mrf.mxu2 }
 0x167   :  { %v2340_v62 = vadd.f32 %v387_v61, %v199_v16  ;;  %v668_v16 = vsel %vm667_vm2, %v1687_v55, %v664_v43 }
 0x168   :  { %v638_v0 = vpop.f32.mrf.mxu1 }
 0x169   :  { %2564 = vst [vmem:[#allocation9_spill] sm:$0xff] %v2340_v62  ;;  %v639_v8 = vadd.f32 %v638_v0, %v2338_v58  ;;  %v669_v62 = vand.u32 2147483647, %v659_v28  ;;  %v672_v0 = vor.u32 1.1754944e-38, %v671_v26 }
 0x16b   :  { %v675_v13 = vadd.f32 %v639_v8, %v371_v4  ;;  %vm670_vm3 = vcmp.eq.f32.partialorder %v669_v62, 8.507059e+37 }
 0x16c   :  { %v673_v5 = vsel %vm670_vm3, %v672_v0, %v668_v16 }
 0x16d   :  { %v1600_v33 = vmul.f32 -1.442695, %v675_v13 }
 0x16e   :  { %v651_v36 = vpop.f32.mrf.mxu2 }
 0x16f   :  { %1688 = vpow2.f32 %v1600_v33  ;;  %v652_v9 = vadd.f32 %v651_v36, %v2343_v10 }
 0x170   :  { %v640_v41 = vpop.f32.mrf.mxu1 }
 0x171   :  { %v695_v4 = vmul.f32 %v673_v5, %v652_v9 }
 0x173   :  { %v696_v13 = vadd.f32 %v695_v4, %v400_v29 }
 0x175   :  { %v1689_v51 = vpop.eup %1688 }
 0x176   :  { %v679_v61 = vadd.f32 1.0, %v1689_v51  ;;  %v653_v18 = vpop.f32.mrf.mxu2 }
 0x178   :  { %1690 = vrcp.f32 %v679_v61  ;;  %v691_v51 = vand.u32 2147483648, %v679_v61  ;;  %v689_v18 = vand.u32 2147483647, %v679_v61  ;;  %vm685_vm5 = vweird.f32 %v679_v61 }
 0x179   :  { %1692 = vtanh.f32 %v696_v13 }
 0x17a   :  { %v692_v36 = vor.u32 1.1754944e-38, %v691_v51  ;;  %vm690_vm7 = vcmp.eq.f32.partialorder %v689_v18, 8.507059e+37 }
 0x17e   :  { %v1691_v41 = vpop.eup %1690 }
 0x17f   :  { %v681_v8 = vmul.f32 %v1691_v41, %v679_v61  ;;  %vm686_vm4 = vweird.f32 %v1691_v41  ;;  %v1693_v40 = vpop.eup %1692  ;;  %v2380_v61 = vpop.f32.mrf.mxu3 }
 0x180   :  { %vm687_vm6 = vmor %vm685_vm5, %vm686_vm4 }
 0x181   :  { %v682_v23 = vsub.f32 1.0, %v681_v8 }
 0x183   :  { %v683_v33 = vmul.f32 %v1691_v41, %v682_v23 }
 0x185   :  { %v684_v28 = vadd.f32 %v1691_v41, %v683_v33 }
 0x187   :  { %v688_v26 = vsel %vm687_vm6, %v1691_v41, %v684_v28 }
 0x188   :  { %v693_v55 = vsel %vm690_vm7, %v692_v36, %v688_v26 }
 0x189   :  { %v698_v62 = vsub.f32 1.0, %v693_v55  ;;  %v700_v9 = vmul.f32 0.0, %v693_v55 }
 0x18b   :  { %v699_v43 = vmul.f32 %v1693_v40, %v698_v62 }
 0x18d   :  { %v2348_v11 = vadd.f32 %v700_v9, %v699_v43 }
 0x18f   :  { %702 = vst [vmem:[%s2558_s7] sm:$0xff] %v2348_v11  ;;  %v707_v16 = vpack.c.bf16 %v2348_v11, %v2348_v11 }
 0x191   :  { %716 = vmatmul.bf16.vlgmr.msrb.gmra.mxu3 %v707_v16  ;;  %729 = vmatmul.bf16.vlgmr.msra.gmra.mxu0 %v707_v16 }
 0x192   :  { %742 = vmatmul.bf16.vlgmr.msra.gmra.mxu1 %v707_v16  ;;  %920 = vmatpush.bf16.msrb.mxu3 %v2088_v56 }
 0x193   :  { %987 = vmatpush.bf16.msra.mxu0 %v1862_v22  ;;  %1000 = vmatpush.bf16.msra.mxu1 %v2065_v50 }
 0x196   :  { %921 = vmatpush.bf16.msrb.mxu3 %v2112_v1 }
 0x197   :  { %988 = vmatpush.bf16.msra.mxu0 %v1892_v35  ;;  %1001 = vmatpush.bf16.msra.mxu1 %v2076_v53 }
 0x19a   :  { %922 = vmatpush.bf16.msrb.mxu3 %v2137_v12 }
 0x19b   :  { %989 = vmatpush.bf16.msra.mxu0 %v1919_v47  ;;  %1002 = vmatpush.bf16.msra.mxu1 %v2098_v59 }
 0x19e   :  { %923 = vmatpush.bf16.msrb.mxu3 %v2160_v21 }
 0x19f   :  { %990 = vmatpush.bf16.msra.mxu0 %v1949_v60  ;;  %1003 = vmatpush.bf16.msra.mxu1 %v2117_v3 }
 0x1a2   :  { %924 = vmatpush.bf16.msrb.mxu3 %v2181_v31 }
 0x1a3   :  { %991 = vmatpush.bf16.msra.mxu0 %v1970_v6  ;;  %1004 = vmatpush.bf16.msra.mxu1 %v2146_v15 }
 0x1a6   :  { %925 = vmatpush.bf16.msrb.mxu3 %v2205_v42 }
 0x1a7   :  { %992 = vmatpush.bf16.msra.mxu0 %v2003_v20  ;;  %1005 = vmatpush.bf16.msra.mxu1 %v2165_v24 }
 0x1aa   :  { %926 = vmatpush.bf16.msrb.mxu3 %v2218_v48 }
 0x1ab   :  { %993 = vmatpush.bf16.msra.mxu0 %v2027_v32  ;;  %1006 = vmatpush.bf16.msra.mxu1 %v2193_v37 }
 0x1ae   :  { %927 = vmatpush.bf16.msrb.mxu3 %v2230_v54 }
 0x1af   :  { %994 = vmatpush.bf16.msra.mxu0 %v2054_v45  ;;  %1007 = vmatpush.bf16.msra.mxu1 %v2214_v46 }
 0x20e   :  { %v730_v0 = vpop.f32.mrf.mxu0 }
 0x20f   :  { %v731_v5 = vadd.f32 %v730_v0, %v2338_v58  ;;  %v743_v4 = vpop.f32.mrf.mxu1 }
 0x211   :  { %v767_v41 = vadd.f32 %v731_v5, %v2290_v19 }
 0x213   :  { %v1602_v29 = vmul.f32 -1.442695, %v767_v41 }
 0x214   :  { %v717_v8 = vpop.f32.mrf.mxu3 }
 0x215   :  { %1694 = vpow2.f32 %v1602_v29  ;;  %v718_v13 = vadd.f32 %v717_v8, %v2307_v39 }
 0x216   :  { %v732_v23 = vpop.f32.mrf.mxu0 }
 0x217   :  { %v747_v51 = vadd.f32 %v718_v13, %v2286_v14  ;;  %v745_v33 = vpop.f32.mrf.mxu1  ;;  %v744_v23 = vadd.f32 %v743_v4, %v2343_v10 }
 0x219   :  { %v1601_v18 = vmul.f32 -1.442695, %v747_v51 }
 0x21b   :  { %v1695_v28 = vpop.eup %1694  ;;  %1696 = vpow2.f32 %v1601_v18 }
 0x21c   :  { %v771_v36 = vadd.f32 1.0, %v1695_v28  ;;  %v719_v26 = vpop.f32.mrf.mxu3 }
 0x21e   :  { %1698 = vrcp.f32 %v771_v36  ;;  %v783_v28 = vand.u32 2147483648, %v771_v36  ;;  %vm777_vm13 = vweird.f32 %v771_v36 }
 0x221   :  { %v1697_v55 = vpop.eup %1696 }
 0x222   :  { %v751_v62 = vadd.f32 1.0, %v1697_v55  ;;  %v781_v55 = vand.u32 2147483647, %v771_v36 }
 0x224   :  { %1700 = vrcp.f32 %v751_v62  ;;  %v1699_v40 = vpop.eup %1698  ;;  %v763_v5 = vand.u32 2147483648, %v751_v62  ;;  %v761_v14 = vand.u32 2147483647, %v751_v62  ;;  %vm757_vm9 = vweird.f32 %v751_v62 }
 0x225   :  { %v773_v19 = vmul.f32 %v1699_v40, %v771_v36  ;;  %vm778_vm12 = vweird.f32 %v1699_v40  ;;  %vm782_vm15 = vcmp.eq.f32.partialorder %v781_v55, 8.507059e+37 }
 0x226   :  { %v764_v13 = vor.u32 1.1754944e-38, %v763_v5  ;;  %vm762_vm11 = vcmp.eq.f32.partialorder %v761_v14, 8.507059e+37  ;;  %vm779_vm14 = vmor %vm777_vm13, %vm778_vm12 }
 0x227   :  { %v774_v16 = vsub.f32 1.0, %v773_v19 }
 0x229   :  { %v775_v29 = vmul.f32 %v1699_v40, %v774_v16  ;;  %v784_v16 = vor.u32 1.1754944e-38, %v783_v28 }
 0x22a   :  { %v1701_v43 = vpop.eup %1700 }
 0x22b   :  { %v753_v9 = vmul.f32 %v1701_v43, %v751_v62  ;;  %vm758_vm8 = vweird.f32 %v1701_v43  ;;  %v776_v18 = vadd.f32 %v1699_v40, %v775_v29 }
 0x22c   :  { %vm759_vm10 = vmor %vm757_vm9, %vm758_vm8 }
 0x22d   :  { %v754_v0 = vsub.f32 1.0, %v753_v9  ;;  %v780_v9 = vsel %vm779_vm14, %v1699_v40, %v776_v18 }
 0x22e   :  { %v785_v62 = vsel %vm782_vm15, %v784_v16, %v780_v9 }
 0x22f   :  { %v755_v41 = vmul.f32 %v1701_v43, %v754_v0  ;;  %v790_v0 = vsub.f32 1.0, %v785_v62 }
 0x231   :  { %v756_v8 = vadd.f32 %v1701_v43, %v755_v41 }
 0x233   :  { %v760_v51 = vsel %vm759_vm10, %v1701_v43, %v756_v8  ;;  %v792_v43 = vmul.f32 %v785_v62, %v2348_v11 }
 0x234   :  { %v765_v33 = vsel %vm762_vm11, %v764_v13, %v760_v51 }
 0x235   :  { %v787_v26 = vmul.f32 %v765_v33, %v744_v23 }
 0x237   :  { %v788_v19 = vadd.f32 %v787_v26, %v2293_v25 }
 0x239   :  { %1702 = vtanh.f32 %v788_v19 }
 0x23f   :  { %v1703_v5 = vpop.eup %1702 }
 0x240   :  { %v791_v4 = vmul.f32 %v1703_v5, %v790_v0 }
 0x242   :  { %v2389_v41 = vadd.f32 %v792_v43, %v791_v4 }
 0x244   :  { %1603 = vst [vmem:[%s2558_s7 + $0x8] sm:$0xff] %v2389_v41  ;;  %v800_v25 = vpack.c.bf16 %v2389_v41, %v2389_v41 }
 0x246   :  { %809 = vmatmul.bf16.vlgmr.msra.gmra.mxu2 %v800_v25  ;;  %822 = vmatmul.bf16.vlgmr.msra.gmra.mxu3 %v800_v25 }
 0x247   :  { %835 = vmatmul.bf16.vlgmr.msrb.gmra.mxu0 %v800_v25  ;;  %1013 = vmatpush.bf16.msra.mxu2 %v2088_v56 }
 0x248   :  { %1080 = vmatpush.bf16.msra.mxu3 %v1862_v22  ;;  %1093 = vmatpush.bf16.msrb.mxu0 %v2065_v50 }
 0x24b   :  { %1014 = vmatpush.bf16.msra.mxu2 %v2112_v1 }
 0x24c   :  { %1081 = vmatpush.bf16.msra.mxu3 %v1892_v35  ;;  %1094 = vmatpush.bf16.msrb.mxu0 %v2076_v53 }
 0x24f   :  { %1015 = vmatpush.bf16.msra.mxu2 %v2137_v12 }
 0x250   :  { %1082 = vmatpush.bf16.msra.mxu3 %v1919_v47  ;;  %1095 = vmatpush.bf16.msrb.mxu0 %v2098_v59 }
 0x253   :  { %1016 = vmatpush.bf16.msra.mxu2 %v2160_v21 }
 0x254   :  { %1083 = vmatpush.bf16.msra.mxu3 %v1949_v60  ;;  %1096 = vmatpush.bf16.msrb.mxu0 %v2117_v3 }
 0x257   :  { %1017 = vmatpush.bf16.msra.mxu2 %v2181_v31 }
 0x258   :  { %1084 = vmatpush.bf16.msra.mxu3 %v1970_v6  ;;  %1097 = vmatpush.bf16.msrb.mxu0 %v2146_v15 }
 0x25b   :  { %1018 = vmatpush.bf16.msra.mxu2 %v2205_v42 }
 0x25c   :  { %1085 = vmatpush.bf16.msra.mxu3 %v2003_v20  ;;  %1098 = vmatpush.bf16.msrb.mxu0 %v2165_v24 }
 0x25f   :  { %1019 = vmatpush.bf16.msra.mxu2 %v2218_v48 }
 0x260   :  { %1086 = vmatpush.bf16.msra.mxu3 %v2027_v32  ;;  %1099 = vmatpush.bf16.msrb.mxu0 %v2193_v37 }
 0x263   :  { %1020 = vmatpush.bf16.msra.mxu2 %v2230_v54 }
 0x264   :  { %1087 = vmatpush.bf16.msra.mxu3 %v2054_v45  ;;  %1100 = vmatpush.bf16.msrb.mxu0 %v2214_v46 }
 0x2c4   :  { %v836_v11 = vpop.f32.mrf.mxu0 }
 0x2c9   :  { %v810_v36 = vpop.f32.mrf.mxu2  ;;  %v823_v40 = vpop.f32.mrf.mxu3 }
 0x2ca   :  { %v811_v14 = vadd.f32 %v810_v36, %v2307_v39  ;;  %v824_v29 = vadd.f32 %v823_v40, %v2338_v58 }
 0x2cc   :  { %v840_v8 = vadd.f32 %v811_v14, %v2295_v27  ;;  %v860_v13 = vadd.f32 %v824_v29, %v2300_v30  ;;  %v838_v23 = vpop.f32.mrf.mxu0  ;;  %v837_v29 = vadd.f32 %v836_v11, %v2343_v10 }
 0x2ce   :  { %v1604_v51 = vmul.f32 -1.442695, %v840_v8  ;;  %v1605_v33 = vmul.f32 -1.442695, %v860_v13 }
 0x2d0   :  { %1704 = vpow2.f32 %v1604_v51 }
 0x2d1   :  { %1706 = vpow2.f32 %v1605_v33  ;;  %v812_v18 = vpop.f32.mrf.mxu2  ;;  %v825_v28 = vpop.f32.mrf.mxu3 }
 0x2d6   :  { %v1705_v26 = vpop.eup %1704 }
 0x2d7   :  { %v1707_v55 = vpop.eup %1706  ;;  %v844_v19 = vadd.f32 1.0, %v1705_v26 }
 0x2d8   :  { %v864_v9 = vadd.f32 1.0, %v1707_v55 }
 0x2d9   :  { %1708 = vrcp.f32 %v844_v19  ;;  %v856_v4 = vand.u32 2147483648, %v844_v19  ;;  %v854_v25 = vand.u32 2147483647, %v844_v19  ;;  %vm850_vm1 = vweird.f32 %v844_v19 }
 0x2da   :  { %1710 = vrcp.f32 %v864_v9  ;;  %v876_v33 = vand.u32 2147483648, %v864_v9  ;;  %vm870_vm5 = vweird.f32 %v864_v9  ;;  %v874_v18 = vand.u32 2147483647, %v864_v9 }
 0x2db   :  { %v857_v14 = vor.u32 1.1754944e-38, %v856_v4  ;;  %vm855_vm3 = vcmp.eq.f32.partialorder %v854_v25, 8.507059e+37 }
 0x2dc   :  { %v877_v55 = vor.u32 1.1754944e-38, %v876_v33  ;;  %vm875_vm7 = vcmp.eq.f32.partialorder %v874_v18, 8.507059e+37 }
 0x2df   :  { %v1709_v16 = vpop.eup %1708 }
 0x2e0   :  { %v1711_v62 = vpop.eup %1710  ;;  %v846_v0 = vmul.f32 %v1709_v16, %v844_v19  ;;  %vm851_vm0 = vweird.f32 %v1709_v16 }
 0x2e1   :  { %v866_v5 = vmul.f32 %v1711_v62, %v864_v9  ;;  %vm852_vm2 = vmor %vm850_vm1, %vm851_vm0  ;;  %vm871_vm4 = vweird.f32 %v1711_v62 }
 0x2e2   :  { %v847_v27 = vsub.f32 1.0, %v846_v0  ;;  %vm872_vm6 = vmor %vm870_vm5, %vm871_vm4 }
 0x2e3   :  { %v867_v30 = vsub.f32 1.0, %v866_v5 }
 0x2e4   :  { %v848_v43 = vmul.f32 %v1709_v16, %v847_v27 }
 0x2e5   :  { %v868_v36 = vmul.f32 %v1711_v62, %v867_v30 }
 0x2e6   :  { %v849_v40 = vadd.f32 %v1709_v16, %v848_v43 }
 0x2e7   :  { %v869_v23 = vadd.f32 %v1711_v62, %v868_v36 }
 0x2e8   :  { %v853_v8 = vsel %vm852_vm2, %v1709_v16, %v849_v40 }
 0x2e9   :  { %v858_v13 = vsel %vm855_vm3, %v857_v14, %v853_v8  ;;  %v873_v26 = vsel %vm872_vm6, %v1711_v62, %v869_v23 }
 0x2ea   :  { %v880_v51 = vmul.f32 %v858_v13, %v837_v29  ;;  %v878_v19 = vsel %vm875_vm7, %v877_v55, %v873_v26 }
 0x2eb   :  { %v883_v0 = vsub.f32 1.0, %v878_v19  ;;  %v885_v16 = vmul.f32 %v878_v19, %v2389_v41 }
 0x2ec   :  { %v881_v28 = vadd.f32 %v880_v51, %v2303_v34 }
 0x2ee   :  { %1712 = vtanh.f32 %v881_v28 }
 0x2f4   :  { %v1713_v5 = vpop.eup %1712 }
 0x2f5   :  { %v884_v11 = vmul.f32 %v1713_v5, %v883_v0 }
 0x2f7   :  { %v2428_v27 = vadd.f32 %v885_v16, %v884_v11 }
 0x2f9   :  { %1606 = vst [vmem:[%s2558_s7 + $0x10] sm:$0xff] %v2428_v27  ;;  %v893_v34 = vpack.c.bf16 %v2428_v27, %v2428_v27 }
 0x2fb   :  { %902 = vmatmul.bf16.vlgmr.msrb.gmra.mxu1 %v893_v34  ;;  %915 = vmatmul.bf16.vlgmr.msrb.gmra.mxu2 %v893_v34 }
 0x2fc   :  { %928 = vmatmul.bf16.vlgmr.msrb.gmra.mxu3 %v893_v34  ;;  %1106 = vmatpush.bf16.msrb.mxu1 %v2088_v56 }
 0x2fd   :  { %1173 = vmatpush.bf16.msrb.mxu2 %v1862_v22  ;;  %1186 = vmatpush.bf16.msrb.mxu3 %v2065_v50 }
 0x300   :  { %1107 = vmatpush.bf16.msrb.mxu1 %v2112_v1 }
 0x301   :  { %1174 = vmatpush.bf16.msrb.mxu2 %v1892_v35  ;;  %1187 = vmatpush.bf16.msrb.mxu3 %v2076_v53 }
 0x304   :  { %1108 = vmatpush.bf16.msrb.mxu1 %v2137_v12 }
 0x305   :  { %1175 = vmatpush.bf16.msrb.mxu2 %v1919_v47  ;;  %1188 = vmatpush.bf16.msrb.mxu3 %v2098_v59 }
 0x308   :  { %1109 = vmatpush.bf16.msrb.mxu1 %v2160_v21 }
 0x309   :  { %1176 = vmatpush.bf16.msrb.mxu2 %v1949_v60  ;;  %1189 = vmatpush.bf16.msrb.mxu3 %v2117_v3 }
 0x30c   :  { %1110 = vmatpush.bf16.msrb.mxu1 %v2181_v31 }
 0x30d   :  { %1177 = vmatpush.bf16.msrb.mxu2 %v1970_v6  ;;  %1190 = vmatpush.bf16.msrb.mxu3 %v2146_v15 }
 0x310   :  { %1111 = vmatpush.bf16.msrb.mxu1 %v2205_v42 }
 0x311   :  { %1178 = vmatpush.bf16.msrb.mxu2 %v2003_v20  ;;  %1191 = vmatpush.bf16.msrb.mxu3 %v2165_v24 }
 0x314   :  { %1112 = vmatpush.bf16.msrb.mxu1 %v2218_v48 }
 0x315   :  { %1179 = vmatpush.bf16.msrb.mxu2 %v2027_v32  ;;  %1192 = vmatpush.bf16.msrb.mxu3 %v2193_v37 }
 0x318   :  { %1113 = vmatpush.bf16.msrb.mxu1 %v2230_v54 }
 0x319   :  { %1180 = vmatpush.bf16.msrb.mxu2 %v2054_v45  ;;  %1193 = vmatpush.bf16.msrb.mxu3 %v2214_v46 }
 0x378   :  { %v903_v41 = vpop.f32.mrf.mxu1 }
 0x379   :  { %v904_v9 = vadd.f32 %v903_v41, %v2307_v39 }
 0x37b   :  { %v933_v62 = vadd.f32 %v904_v9, %v2305_v38 }
 0x37d   :  { %v1607_v4 = vmul.f32 -1.442695, %v933_v62 }
 0x37e   :  { %v916_v30 = vpop.f32.mrf.mxu2 }
 0x37f   :  { %1714 = vpow2.f32 %v1607_v4  ;;  %v917_v43 = vadd.f32 %v916_v30, %v2338_v58  ;;  %v929_v25 = vpop.f32.mrf.mxu3 }
 0x380   :  { %v905_v36 = vpop.f32.mrf.mxu1  ;;  %v930_v34 = vadd.f32 %v929_v25, %v2343_v10 }
 0x381   :  { %v953_v40 = vadd.f32 %v917_v43, %v2310_v44 }
 0x383   :  { %v1608_v14 = vmul.f32 -1.442695, %v953_v40 }
 0x385   :  { %v1715_v29 = vpop.eup %1714  ;;  %1716 = vpow2.f32 %v1608_v14 }
 0x386   :  { %v937_v8 = vadd.f32 1.0, %v1715_v29  ;;  %v918_v13 = vpop.f32.mrf.mxu2 }
 0x387   :  { %v931_v23 = vpop.f32.mrf.mxu3 }
 0x388   :  { %1718 = vrcp.f32 %v937_v8  ;;  %v949_v26 = vand.u32 2147483648, %v937_v8  ;;  %v947_v19 = vand.u32 2147483647, %v937_v8  ;;  %vm943_vm9 = vweird.f32 %v937_v8 }
 0x38a   :  { %v950_v11 = vor.u32 1.1754944e-38, %v949_v26  ;;  %vm948_vm11 = vcmp.eq.f32.partialorder %v947_v19, 8.507059e+37 }
 0x38b   :  { %v1717_v51 = vpop.eup %1716 }
 0x38c   :  { %v957_v33 = vadd.f32 1.0, %v1717_v51 }
 0x38e   :  { %v1719_v18 = vpop.eup %1718  ;;  %1720 = vrcp.f32 %v957_v33  ;;  %v969_v4 = vand.u32 2147483648, %v957_v33  ;;  %v967_v43 = vand.u32 2147483647, %v957_v33  ;;  %vm963_vm13 = vweird.f32 %v957_v33 }
 0x38f   :  { %v939_v38 = vmul.f32 %v1719_v18, %v937_v8  ;;  %vm944_vm8 = vweird.f32 %v1719_v18 }
 0x390   :  { %vm945_vm10 = vmor %vm943_vm9, %vm944_vm8  ;;  %v970_v14 = vor.u32 1.1754944e-38, %v969_v4  ;;  %vm968_vm15 = vcmp.eq.f32.partialorder %v967_v43, 8.507059e+37 }
 0x391   :  { %v940_v28 = vsub.f32 1.0, %v939_v38 }
 0x393   :  { %v941_v55 = vmul.f32 %v1719_v18, %v940_v28 }
 0x394   :  { %v1721_v0 = vpop.eup %1720 }
 0x395   :  { %v959_v5 = vmul.f32 %v1721_v0, %v957_v33  ;;  %v942_v44 = vadd.f32 %v1719_v18, %v941_v55  ;;  %vm964_vm12 = vweird.f32 %v1721_v0 }
 0x396   :  { %vm965_vm14 = vmor %vm963_vm13, %vm964_vm12 }
 0x397   :  { %v960_v16 = vsub.f32 1.0, %v959_v5  ;;  %v946_v41 = vsel %vm945_vm10, %v1719_v18, %v942_v44 }
 0x398   :  { %v951_v9 = vsel %vm948_vm11, %v950_v11, %v946_v41 }
 0x399   :  { %v961_v62 = vmul.f32 %v1721_v0, %v960_v16  ;;  %v973_v30 = vmul.f32 %v951_v9, %v930_v34 }
 0x39b   :  { %v962_v36 = vadd.f32 %v1721_v0, %v961_v62  ;;  %v974_v40 = vadd.f32 %v973_v30, %v2313_v52 }
 0x39d   :  { %v966_v29 = vsel %vm965_vm14, %v1721_v0, %v962_v36  ;;  %1722 = vtanh.f32 %v974_v40 }
 0x39e   :  { %v971_v8 = vsel %vm968_vm15, %v970_v14, %v966_v29 }
 0x39f   :  { %v976_v13 = vsub.f32 1.0, %v971_v8  ;;  %v978_v51 = vmul.f32 %v971_v8, %v2428_v27 }
 0x3a3   :  { %v1723_v25 = vpop.eup %1722 }
 0x3a4   :  { %v977_v23 = vmul.f32 %v1723_v25, %v976_v13 }
 0x3a6   :  { %v2467_v18 = vadd.f32 %v978_v51, %v977_v23 }
 0x3a8   :  { %1609 = vst [vmem:[%s2558_s7 + $0x18] sm:$0xff] %v2467_v18  ;;  %v986_v52 = vpack.c.bf16 %v2467_v18, %v2467_v18 }
 0x3aa   :  { %995 = vmatmul.bf16.vlgmr.msra.gmra.mxu0 %v986_v52  ;;  %1008 = vmatmul.bf16.vlgmr.msra.gmra.mxu1 %v986_v52 }
 0x3ab   :  { %1021 = vmatmul.bf16.vlgmr.msra.gmra.mxu2 %v986_v52  ;;  %1199 = vmatpush.bf16.msra.mxu0 %v2088_v56 }
 0x3ac   :  { %1266 = vmatpush.bf16.msra.mxu1 %v1862_v22  ;;  %1279 = vmatpush.bf16.msra.mxu2 %v2065_v50 }
 0x3af   :  { %1200 = vmatpush.bf16.msra.mxu0 %v2112_v1 }
 0x3b0   :  { %1267 = vmatpush.bf16.msra.mxu1 %v1892_v35  ;;  %1280 = vmatpush.bf16.msra.mxu2 %v2076_v53 }
 0x3b3   :  { %1201 = vmatpush.bf16.msra.mxu0 %v2137_v12 }
 0x3b4   :  { %1268 = vmatpush.bf16.msra.mxu1 %v1919_v47  ;;  %1281 = vmatpush.bf16.msra.mxu2 %v2098_v59 }
 0x3b7   :  { %1202 = vmatpush.bf16.msra.mxu0 %v2160_v21 }
 0x3b8   :  { %1269 = vmatpush.bf16.msra.mxu1 %v1949_v60  ;;  %1282 = vmatpush.bf16.msra.mxu2 %v2117_v3 }
 0x3bb   :  { %1203 = vmatpush.bf16.msra.mxu0 %v2181_v31 }
 0x3bc   :  { %1270 = vmatpush.bf16.msra.mxu1 %v1970_v6  ;;  %1283 = vmatpush.bf16.msra.mxu2 %v2146_v15 }
 0x3bf   :  { %1204 = vmatpush.bf16.msra.mxu0 %v2205_v42 }
 0x3c0   :  { %1271 = vmatpush.bf16.msra.mxu1 %v2003_v20  ;;  %1284 = vmatpush.bf16.msra.mxu2 %v2165_v24 }
 0x3c3   :  { %1205 = vmatpush.bf16.msra.mxu0 %v2218_v48 }
 0x3c4   :  { %1272 = vmatpush.bf16.msra.mxu1 %v2027_v32  ;;  %1285 = vmatpush.bf16.msra.mxu2 %v2193_v37 }
 0x3c7   :  { %1206 = vmatpush.bf16.msra.mxu0 %v2230_v54 }
 0x3c8   :  { %1273 = vmatpush.bf16.msra.mxu1 %v2054_v45  ;;  %1286 = vmatpush.bf16.msra.mxu2 %v2214_v46 }
 0x427   :  { %v996_v22 = vpop.f32.mrf.mxu0  ;;  %v1009_v35 = vpop.f32.mrf.mxu1 }
 0x428   :  { %v997_v47 = vadd.f32 %v996_v22, %v2307_v39  ;;  %v1010_v60 = vadd.f32 %v1009_v35, %v2338_v58 }
 0x42a   :  { %v1026_v6 = vadd.f32 %v997_v47, %v2315_v57  ;;  %v1046_v20 = vadd.f32 %v1010_v60, %v2317_v63 }
 0x42c   :  { %v1610_v50 = vmul.f32 -1.442695, %v1026_v6  ;;  %v1611_v32 = vmul.f32 -1.442695, %v1046_v20 }
 0x42e   :  { %1724 = vpow2.f32 %v1610_v50  ;;  %v1022_v53 = vpop.f32.mrf.mxu2 }
 0x42f   :  { %1726 = vpow2.f32 %v1611_v32  ;;  %v998_v59 = vpop.f32.mrf.mxu0  ;;  %v1011_v3 = vpop.f32.mrf.mxu1  ;;  %v1023_v11 = vadd.f32 %v1022_v53, %v2343_v10 }
 0x434   :  { %v1725_v45 = vpop.eup %1724 }
 0x435   :  { %v1727_v15 = vpop.eup %1726  ;;  %v1030_v24 = vadd.f32 1.0, %v1725_v45 }
 0x436   :  { %v1050_v37 = vadd.f32 1.0, %v1727_v15  ;;  %v1024_v46 = vpop.f32.mrf.mxu2 }
 0x437   :  { %1728 = vrcp.f32 %v1030_v24  ;;  %v1042_v26 = vand.u32 2147483648, %v1030_v24  ;;  %v1040_v19 = vand.u32 2147483647, %v1030_v24  ;;  %vm1036_vm1 = vweird.f32 %v1030_v24 }
 0x438   :  { %1730 = vrcp.f32 %v1050_v37  ;;  %v1062_v9 = vand.u32 2147483648, %v1050_v37  ;;  %vm1056_vm5 = vweird.f32 %v1050_v37  ;;  %v1060_v4 = vand.u32 2147483647, %v1050_v37 }
 0x439   :  { %v1043_v44 = vor.u32 1.1754944e-38, %v1042_v26  ;;  %vm1041_vm3 = vcmp.eq.f32.partialorder %v1040_v19, 8.507059e+37 }
 0x43a   :  { %v1063_v36 = vor.u32 1.1754944e-38, %v1062_v9  ;;  %vm1061_vm7 = vcmp.eq.f32.partialorder %v1060_v4, 8.507059e+37 }
 0x43d   :  { %v1729_v27 = vpop.eup %1728 }
 0x43e   :  { %v1731_v33 = vpop.eup %1730  ;;  %v1032_v38 = vmul.f32 %v1729_v27, %v1030_v24  ;;  %vm1037_vm0 = vweird.f32 %v1729_v27 }
 0x43f   :  { %v1052_v57 = vmul.f32 %v1731_v33, %v1050_v37  ;;  %vm1038_vm2 = vmor %vm1036_vm1, %vm1037_vm0  ;;  %vm1057_vm4 = vweird.f32 %v1731_v33 }
 0x440   :  { %v1033_v28 = vsub.f32 1.0, %v1032_v38  ;;  %vm1058_vm6 = vmor %vm1056_vm5, %vm1057_vm4 }
 0x441   :  { %v1053_v63 = vsub.f32 1.0, %v1052_v57 }
 0x442   :  { %v1034_v55 = vmul.f32 %v1729_v27, %v1033_v28 }
 0x443   :  { %v1054_v0 = vmul.f32 %v1731_v33, %v1053_v63  ;;  %v2565_v63 = vld [vmem:[#allocation4_spill] sm:$0xff] }
 0x444   :  { %v1035_v5 = vadd.f32 %v1729_v27, %v1034_v55 }
 0x445   :  { %v1055_v41 = vadd.f32 %v1731_v33, %v1054_v0 }
 0x446   :  { %v1039_v16 = vsel %vm1038_vm2, %v1729_v27, %v1035_v5 }
 0x447   :  { %v1044_v34 = vsel %vm1041_vm3, %v1043_v44, %v1039_v16  ;;  %v1059_v43 = vsel %vm1058_vm6, %v1731_v33, %v1055_v41 }
 0x448   :  { %v1066_v62 = vmul.f32 %v1044_v34, %v1023_v11  ;;  %v1064_v40 = vsel %vm1061_vm7, %v1063_v36, %v1059_v43  ;;  %v2566_v36 = vld [vmem:[#allocation5_spill] sm:$0xff] }
 0x449   :  { %v1069_v14 = vsub.f32 1.0, %v1064_v40  ;;  %v1071_v13 = vmul.f32 %v1064_v40, %v2467_v18 }
 0x44a   :  { %v1067_v30 = vadd.f32 %v1066_v62, %v2320_v2 }
 0x44c   :  { %1732 = vtanh.f32 %v1067_v30 }
 0x452   :  { %v1733_v29 = vpop.eup %1732 }
 0x453   :  { %v1070_v8 = vmul.f32 %v1733_v29, %v1069_v14  ;;  %v2567_v14 = vld [vmem:[#allocation6_spill] sm:$0xff] }
 0x455   :  { %v2506_v25 = vadd.f32 %v1071_v13, %v1070_v8 }
 0x457   :  { %1612 = vst [vmem:[%s2558_s7 + $0x20] sm:$0xff] %v2506_v25  ;;  %v1079_v2 = vpack.c.bf16 %v2506_v25, %v2506_v25 }
 0x459   :  { %1088 = vmatmul.bf16.vlgmr.msra.gmra.mxu3 %v1079_v2  ;;  %1101 = vmatmul.bf16.vlgmr.msrb.gmra.mxu0 %v1079_v2 }
 0x45a   :  { %1114 = vmatmul.bf16.vlgmr.msrb.gmra.mxu1 %v1079_v2  ;;  %1292 = vmatpush.bf16.msra.mxu3 %v2088_v56 }
 0x45e   :  { %1293 = vmatpush.bf16.msra.mxu3 %v2112_v1 }
 0x462   :  { %1294 = vmatpush.bf16.msra.mxu3 %v2137_v12 }
 0x466   :  { %1295 = vmatpush.bf16.msra.mxu3 %v2160_v21 }
 0x46a   :  { %1296 = vmatpush.bf16.msra.mxu3 %v2181_v31 }
 0x46e   :  { %1297 = vmatpush.bf16.msra.mxu3 %v2205_v42 }
 0x472   :  { %1298 = vmatpush.bf16.msra.mxu3 %v2218_v48 }
 0x476   :  { %1299 = vmatpush.bf16.msra.mxu3 %v2230_v54 }
 0x4d6   :  { %v1102_v23 = vpop.f32.mrf.mxu0 }
 0x4d7   :  { %v1103_v51 = vadd.f32 %v1102_v23, %v2338_v58  ;;  %v1115_v18 = vpop.f32.mrf.mxu1 }
 0x4d8   :  { %v1116_v37 = vadd.f32 %v1115_v18, %v2343_v10 }
 0x4d9   :  { %v1139_v56 = vadd.f32 %v1103_v51, %v2324_v7 }
 0x4db   :  { %v1614_v52 = vmul.f32 -1.442695, %v1139_v56 }
 0x4dc   :  { %v1089_v1 = vpop.f32.mrf.mxu3 }
 0x4dd   :  { %1734 = vpow2.f32 %v1614_v52  ;;  %v1090_v12 = vadd.f32 %v1089_v1, %v2307_v39 }
 0x4de   :  { %v1104_v21 = vpop.f32.mrf.mxu0 }
 0x4df   :  { %v1119_v31 = vadd.f32 %v1090_v12, %v2322_v49  ;;  %v1117_v22 = vpop.f32.mrf.mxu1 }
 0x4e1   :  { %v1613_v42 = vmul.f32 -1.442695, %v1119_v31 }
 0x4e3   :  { %v1735_v35 = vpop.eup %1734  ;;  %1736 = vpow2.f32 %v1613_v42 }
 0x4e4   :  { %v1143_v48 = vadd.f32 1.0, %v1735_v35  ;;  %v1091_v54 = vpop.f32.mrf.mxu3 }
 0x4e6   :  { %1738 = vrcp.f32 %v1143_v48  ;;  %v1155_v38 = vand.u32 2147483648, %v1143_v48  ;;  %vm1149_vm13 = vweird.f32 %v1143_v48  ;;  %v1153_v28 = vand.u32 2147483647, %v1143_v48 }
 0x4e8   :  { %v1156_v19 = vor.u32 1.1754944e-38, %v1155_v38  ;;  %vm1154_vm15 = vcmp.eq.f32.partialorder %v1153_v28, 8.507059e+37 }
 0x4e9   :  { %v1737_v47 = vpop.eup %1736 }
 0x4ea   :  { %v1123_v60 = vadd.f32 1.0, %v1737_v47 }
 0x4ec   :  { %1740 = vrcp.f32 %v1123_v60  ;;  %v1739_v6 = vpop.eup %1738  ;;  %v1135_v59 = vand.u32 2147483648, %v1123_v60  ;;  %v1133_v49 = vand.u32 2147483647, %v1123_v60  ;;  %vm1129_vm9 = vweird.f32 %v1123_v60 }
 0x4ed   :  { %v1145_v7 = vmul.f32 %v1739_v6, %v1143_v48  ;;  %vm1150_vm12 = vweird.f32 %v1739_v6 }
 0x4ee   :  { %v1136_v24 = vor.u32 1.1754944e-38, %v1135_v59  ;;  %vm1134_vm11 = vcmp.eq.f32.partialorder %v1133_v49, 8.507059e+37  ;;  %vm1151_vm14 = vmor %vm1149_vm13, %vm1150_vm12  ;;  %v2568_v49 = vld [vmem:[#allocation7_spill] sm:$0xff] }
 0x4ef   :  { %v1146_v32 = vsub.f32 1.0, %v1145_v7 }
 0x4f1   :  { %v1147_v45 = vmul.f32 %v1739_v6, %v1146_v32 }
 0x4f2   :  { %v1741_v20 = vpop.eup %1740 }
 0x4f3   :  { %v1125_v50 = vmul.f32 %v1741_v20, %v1123_v60  ;;  %vm1130_vm8 = vweird.f32 %v1741_v20  ;;  %v1148_v33 = vadd.f32 %v1739_v6, %v1147_v45 }
 0x4f4   :  { %vm1131_vm10 = vmor %vm1129_vm9, %vm1130_vm8 }
 0x4f5   :  { %v1126_v53 = vsub.f32 1.0, %v1125_v50  ;;  %v1152_v55 = vsel %vm1151_vm14, %v1739_v6, %v1148_v33 }
 0x4f6   :  { %v1157_v0 = vsel %vm1154_vm15, %v1156_v19, %v1152_v55  ;;  %v2569_v55 = vld [vmem:[#allocation8_spill] sm:$0xff] }
 0x4f7   :  { %v1127_v3 = vmul.f32 %v1741_v20, %v1126_v53  ;;  %v1162_v5 = vsub.f32 1.0, %v1157_v0  ;;  %v1164_v16 = vmul.f32 %v1157_v0, %v2506_v25 }
 0x4f9   :  { %v1128_v15 = vadd.f32 %v1741_v20, %v1127_v3 }
 0x4fb   :  { %v1132_v46 = vsel %vm1131_vm10, %v1741_v20, %v1128_v15 }
 0x4fc   :  { %v1137_v27 = vsel %vm1134_vm11, %v1136_v24, %v1132_v46 }
 0x4fd   :  { %v1159_v57 = vmul.f32 %v1137_v27, %v1116_v37 }
 0x4ff   :  { %v1160_v26 = vadd.f32 %v1159_v57, %v2565_v63 }
 0x501   :  { %1742 = vtanh.f32 %v1160_v26 }
 0x507   :  { %v1743_v44 = vpop.eup %1742 }
 0x508   :  { %v1163_v11 = vmul.f32 %v1743_v44, %v1162_v5 }
 0x50a   :  { %v1165_v34 = vadd.f32 %v1164_v16, %v1163_v11 }
 0x50c   :  { %1615 = vst [vmem:[%s2558_s7 + $0x28] sm:$0xff] %v1165_v34  ;;  %v1172_v41 = vpack.c.bf16 %v1165_v34, %v1165_v34 }
 0x50e   :  { %1181 = vmatmul.bf16.vlgmr.msrb.gmra.mxu2 %v1172_v41  ;;  %1194 = vmatmul.bf16.vlgmr.msrb.gmra.mxu3 %v1172_v41 }
 0x50f   :  { %1207 = vmatmul.bf16.vlgmr.msra.gmra.mxu0 %v1172_v41 }
 0x58c   :  { %v1208_v9 = vpop.f32.mrf.mxu0 }
 0x58d   :  { %v1209_v7 = vadd.f32 %v1208_v9, %v2343_v10 }
 0x591   :  { %v1182_v62 = vpop.f32.mrf.mxu2  ;;  %v1195_v4 = vpop.f32.mrf.mxu3 }
 0x592   :  { %v1183_v30 = vadd.f32 %v1182_v62, %v2307_v39  ;;  %v1196_v43 = vadd.f32 %v1195_v4, %v2338_v58 }
 0x594   :  { %v1212_v40 = vadd.f32 %v1183_v30, %v2566_v36  ;;  %v1232_v29 = vadd.f32 %v1196_v43, %v2567_v14  ;;  %v1210_v8 = vpop.f32.mrf.mxu0 }
 0x596   :  { %v1616_v13 = vmul.f32 -1.442695, %v1212_v40  ;;  %v1617_v25 = vmul.f32 -1.442695, %v1232_v29 }
 0x598   :  { %1744 = vpow2.f32 %v1616_v13 }
 0x599   :  { %1746 = vpow2.f32 %v1617_v25  ;;  %v1184_v2 = vpop.f32.mrf.mxu2  ;;  %v1197_v23 = vpop.f32.mrf.mxu3 }
 0x59e   :  { %v1745_v51 = vpop.eup %1744 }
 0x59f   :  { %v1747_v18 = vpop.eup %1746  ;;  %v1216_v56 = vadd.f32 1.0, %v1745_v51 }
 0x5a0   :  { %v1236_v52 = vadd.f32 1.0, %v1747_v18 }
 0x5a1   :  { %1748 = vrcp.f32 %v1216_v56  ;;  %v1228_v42 = vand.u32 2147483648, %v1216_v56  ;;  %v1226_v54 = vand.u32 2147483647, %v1216_v56  ;;  %vm1222_vm1 = vweird.f32 %v1216_v56 }
 0x5a2   :  { %1750 = vrcp.f32 %v1236_v52  ;;  %v1248_v59 = vand.u32 2147483648, %v1236_v52  ;;  %vm1242_vm5 = vweird.f32 %v1236_v52  ;;  %v1246_v3 = vand.u32 2147483647, %v1236_v52 }
 0x5a3   :  { %v1229_v6 = vor.u32 1.1754944e-38, %v1228_v42  ;;  %vm1227_vm3 = vcmp.eq.f32.partialorder %v1226_v54, 8.507059e+37 }
 0x5a4   :  { %v1249_v24 = vor.u32 1.1754944e-38, %v1248_v59  ;;  %vm1247_vm7 = vcmp.eq.f32.partialorder %v1246_v3, 8.507059e+37 }
 0x5a7   :  { %v1749_v1 = vpop.eup %1748 }
 0x5a8   :  { %v1751_v12 = vpop.eup %1750  ;;  %v1218_v21 = vmul.f32 %v1749_v1, %v1216_v56  ;;  %vm1223_vm0 = vweird.f32 %v1749_v1 }
 0x5a9   :  { %v1238_v31 = vmul.f32 %v1751_v12, %v1236_v52  ;;  %vm1224_vm2 = vmor %vm1222_vm1, %vm1223_vm0  ;;  %vm1243_vm4 = vweird.f32 %v1751_v12 }
 0x5aa   :  { %v1219_v22 = vsub.f32 1.0, %v1218_v21  ;;  %vm1244_vm6 = vmor %vm1242_vm5, %vm1243_vm4 }
 0x5ab   :  { %v1239_v35 = vsub.f32 1.0, %v1238_v31 }
 0x5ac   :  { %v1220_v48 = vmul.f32 %v1749_v1, %v1219_v22 }
 0x5ad   :  { %v1240_v47 = vmul.f32 %v1751_v12, %v1239_v35 }
 0x5ae   :  { %v1221_v60 = vadd.f32 %v1749_v1, %v1220_v48 }
 0x5af   :  { %v1241_v32 = vadd.f32 %v1751_v12, %v1240_v47 }
 0x5b0   :  { %v1225_v20 = vsel %vm1224_vm2, %v1749_v1, %v1221_v60  ;;  %v417_v1 = vadd.f32 %v2380_v61, %v2288_v17 }
 0x5b1   :  { %v1230_v50 = vsel %vm1227_vm3, %v1229_v6, %v1225_v20  ;;  %v1245_v15 = vsel %vm1244_vm6, %v1751_v12, %v1241_v32 }
 0x5b2   :  { %v1252_v53 = vmul.f32 %v1230_v50, %v1209_v7  ;;  %v1250_v37 = vsel %vm1247_vm7, %v1249_v24, %v1245_v15 }
 0x5b3   :  { %v1255_v46 = vsub.f32 1.0, %v1250_v37  ;;  %v1257_v38 = vmul.f32 %v1250_v37, %v1165_v34  ;;  %v2570_v34 = vld [vmem:[#allocation9_spill] sm:$0xff] }
 0x5b4   :  { %v1253_v45 = vadd.f32 %v1252_v53, %v2568_v49 }
 0x5b6   :  { %1752 = vtanh.f32 %v1253_v45 }
 0x5bc   :  { %v1753_v27 = vpop.eup %1752 }
 0x5bd   :  { %v1256_v33 = vmul.f32 %v1753_v27, %v1255_v46 }
 0x5bf   :  { %v1258_v57 = vadd.f32 %v1257_v38, %v1256_v33 }
 0x5c1   :  { %1618 = vst [vmem:[%s2558_s7 + $0x30] sm:$0xff] %v1258_v57  ;;  %v1265_v28 = vpack.c.bf16 %v1258_v57, %v1258_v57 }
 0x5c3   :  { %1274 = vmatmul.bf16.vlgmr.msra.gmra.mxu1 %v1265_v28  ;;  %1287 = vmatmul.bf16.vlgmr.msra.gmra.mxu2 %v1265_v28 }
 0x5c4   :  { %1300 = vmatmul.bf16.vlgmr.msra.gmra.mxu3 %v1265_v28 }
 0x640   :  { %v1275_v63 = vpop.f32.mrf.mxu1 }
 0x641   :  { %v1276_v26 = vadd.f32 %v1275_v63, %v2307_v39 }
 0x643   :  { %v1305_v19 = vadd.f32 %v1276_v26, %v2569_v55 }
 0x645   :  { %v1619_v0 = vmul.f32 -1.442695, %v1305_v19 }
 0x646   :  { %v1288_v5 = vpop.f32.mrf.mxu2 }
 0x647   :  { %1754 = vpow2.f32 %v1619_v0  ;;  %v1289_v44 = vadd.f32 %v1288_v5, %v2338_v58  ;;  %v1301_v11 = vpop.f32.mrf.mxu3 }
 0x648   :  { %v1277_v16 = vpop.f32.mrf.mxu1  ;;  %v1302_v56 = vadd.f32 %v1301_v11, %v2343_v10 }
 0x649   :  { %v1325_v41 = vadd.f32 %v1289_v44, %v2570_v34 }
 0x64b   :  { %v1620_v9 = vmul.f32 -1.442695, %v1325_v41 }
 0x64d   :  { %v1755_v62 = vpop.eup %1754  ;;  %1756 = vpow2.f32 %v1620_v9 }
 0x64e   :  { %v1309_v4 = vadd.f32 1.0, %v1755_v62  ;;  %v1290_v30 = vpop.f32.mrf.mxu2 }
 0x64f   :  { %v1303_v43 = vpop.f32.mrf.mxu3 }
 0x650   :  { %1758 = vrcp.f32 %v1309_v4  ;;  %v1321_v8 = vand.u32 2147483648, %v1309_v4  ;;  %v1319_v58 = vand.u32 2147483647, %v1309_v4  ;;  %vm1315_vm9 = vweird.f32 %v1309_v4 }
 0x652   :  { %v1322_v51 = vor.u32 1.1754944e-38, %v1321_v8  ;;  %vm1320_vm11 = vcmp.eq.f32.partialorder %v1319_v58, 8.507059e+37 }
 0x653   :  { %v1757_v36 = vpop.eup %1756 }
 0x654   :  { %v1329_v39 = vadd.f32 1.0, %v1757_v36 }
 0x656   :  { %v1759_v40 = vpop.eup %1758  ;;  %1760 = vrcp.f32 %v1329_v39  ;;  %v1341_v31 = vand.u32 2147483648, %v1329_v39  ;;  %v1339_v42 = vand.u32 2147483647, %v1329_v39  ;;  %vm1335_vm13 = vweird.f32 %v1329_v39 }
 0x657   :  { %v1311_v14 = vmul.f32 %v1759_v40, %v1309_v4  ;;  %vm1316_vm8 = vweird.f32 %v1759_v40 }
 0x658   :  { %vm1317_vm10 = vmor %vm1315_vm9, %vm1316_vm8  ;;  %v1342_v54 = vor.u32 1.1754944e-38, %v1341_v31  ;;  %vm1340_vm15 = vcmp.eq.f32.partialorder %v1339_v42, 8.507059e+37 }
 0x659   :  { %v1312_v29 = vsub.f32 1.0, %v1311_v14 }
 0x65b   :  { %v1313_v13 = vmul.f32 %v1759_v40, %v1312_v29 }
 0x65c   :  { %v1761_v25 = vpop.eup %1760 }
 0x65d   :  { %v1331_v2 = vmul.f32 %v1761_v25, %v1329_v39  ;;  %v1314_v23 = vadd.f32 %v1759_v40, %v1313_v13  ;;  %vm1336_vm12 = vweird.f32 %v1761_v25 }
 0x65e   :  { %vm1337_vm14 = vmor %vm1335_vm13, %vm1336_vm12 }
 0x65f   :  { %v1332_v18 = vsub.f32 1.0, %v1331_v2  ;;  %v1318_v52 = vsel %vm1317_vm10, %v1759_v40, %v1314_v23 }
 0x660   :  { %v1323_v12 = vsel %vm1320_vm11, %v1322_v51, %v1318_v52 }
 0x661   :  { %v1333_v21 = vmul.f32 %v1761_v25, %v1332_v18  ;;  %v1345_v22 = vmul.f32 %v1323_v12, %v1302_v56 }
 0x663   :  { %v1334_v35 = vadd.f32 %v1761_v25, %v1333_v21  ;;  %v1346_v48 = vadd.f32 %v1345_v22, %v417_v1 }
 0x665   :  { %v1338_v47 = vsel %vm1337_vm14, %v1761_v25, %v1334_v35  ;;  %1762 = vtanh.f32 %v1346_v48 }
 0x666   :  { %v1343_v10 = vsel %vm1340_vm15, %v1342_v54, %v1338_v47 }
 0x667   :  { %v1348_v60 = vsub.f32 1.0, %v1343_v10  ;;  %v1350_v20 = vmul.f32 %v1343_v10, %v1258_v57 }
 0x66b   :  { %v1763_v6 = vpop.eup %1762 }
 0x66c   :  { %v1349_v7 = vmul.f32 %v1763_v6, %v1348_v60 }
 0x66e   :  { %v1351_v17 = vadd.f32 %v1350_v20, %v1349_v7 }
 0x670   :  { %1621 = vst [vmem:[%s2558_s7 + $0x38] sm:$0xff] %v1351_v17 }

</bundles_post_ra>
